<compile_context>
chip_gen: v7x
topology: tpu7x:2x2x1
jax: 0.10.0
libtpu: 0.0.40
codegen_flags: <defaults>
</compile_context>

<pallas_src>
from functools import partial

import jax
import jax.numpy as jnp
from jax import lax
from jax.experimental import pallas as pl
from jax.experimental.pallas import tpu as pltpu


# ----------------------------------------------------------------------------
# Helpers
# ----------------------------------------------------------------------------
def _round_up(x, m):
    return ((x + m - 1) // m) * m


def _pick_tile(dim, candidates=(512, 256, 128)):
    """Largest candidate dividing `dim` (dims are pre-padded to 128 multiples)."""
    for c in candidates:
        if c <= dim and dim % c == 0:
            return c
    return 128


def _pick_time_chunk(T, b, h, budget_bytes=40 * 1024 * 1024):
    """Largest time chunk whose double-buffered gi/y stream + resident W_hh fits."""
    g3 = 3 * h
    fixed = 2 * (h * g3 * 2) + 3 * b * h * 4 + 4 * g3     # W_hh x2 (bf16), h blocks, biases
    for tt in (128, 64, 32, 16, 8, 4, 2, 1):
        if tt <= T and T % tt == 0:
            per = 2 * (tt * b * g3 * 2) + 2 * (tt * b * h * 2)   # bf16 gi + y, x2 buffers
            if fixed + per <= budget_bytes:
                return tt
    return 1


# ----------------------------------------------------------------------------
# Pallas kernels
# ----------------------------------------------------------------------------
def _matmul_bias_kernel(x_ref, w_ref, b_ref, o_ref, acc_ref):
    """Tiled (M,K)@(K,N)+b with f32 accumulator. Grid = (M//tm, N//tn, K//tk)."""
    @pl.when(pl.program_id(2) == 0)
    def _():
        acc_ref[...] = jnp.zeros_like(acc_ref)

    acc_ref[...] += jnp.dot(x_ref[...], w_ref[...],
                            preferred_element_type=jnp.float32)

    @pl.when(pl.program_id(2) == pl.num_programs(2) - 1)
    def _():
        o_ref[...] = (acc_ref[...] + b_ref[...].astype(jnp.float32)).astype(o_ref.dtype)


def _gru_recurrent_kernel(gi_ref, w_hh_ref, b_hh_n_ref, h0_ref,
                          y_ref, hT_ref, h_scr):
    """Recurrent part of one GRU layer, time-chunked.

    Grid = (nb, T // TT); axis 0 = independent batch blocks ("parallel",
    gives v7x's second TensorCore work), axis 1 = sequential time chunks.

    gi_ref    : (TT, bb, 3H) bf16  precomputed x@W_ih + biases (r/z hidden
                                   biases pre-summed; n hidden bias separate)
    w_hh_ref  : (H, 3H) bf16       pre-transposed hidden weights (order r,z,n)
    b_hh_n_ref: (1, H)  f32        hidden bias of the n gate
    h0_ref    : (bb, H) f32        initial hidden state for this batch block
    y_ref     : (TT, bb, H) bf16   layer output for this time chunk
    hT_ref    : (bb, H) f32        final hidden state (written on last chunk)
    h_scr     : (bb, H) f32        hidden state carried across time chunks
    """
    c = pl.program_id(1)

    @pl.when(c == 0)
    def _():
        h_scr[...] = h0_ref[...]

    B, H = h_scr.shape
    TT = gi_ref.shape[0]
    w_hh = w_hh_ref[...]                                        # resident bf16 weights
    # Hoisted broadcast (JAX does not CSE broadcast_in_dim inside the loop).
    b_hh_n = jnp.broadcast_to(b_hh_n_ref[...].astype(jnp.float32), (B, H))

    def step(t, h):
        gi = gi_ref[t].astype(jnp.float32)                      # (B, 3H) bf16 -> f32
        gh = jnp.dot(h.astype(w_hh.dtype), w_hh,
                     preferred_element_type=jnp.float32)        # (B, 3H)
        i_r, i_z, i_n = gi[:, :H], gi[:, H:2 * H], gi[:, 2 * H:]
        h_r, h_z, h_n = gh[:, :H], gh[:, H:2 * H], gh[:, 2 * H:]
        r = jax.nn.sigmoid(i_r + h_r)
        z = jax.nn.sigmoid(i_z + h_z)
        n = jnp.tanh(i_n + r * (h_n + b_hh_n))
        h_new = (1.0 - z) * n + z * h
        y_ref[t] = h_new.astype(y_ref.dtype)
        return h_new

    # Cap the unroll: fully unrolling large TT keeps ~3H/128 vregs live per step
    # and spills; partial unroll keeps LLO scheduling without blowing the vreg file.
    unroll = TT if TT <= 8 else 4
    h_final = lax.fori_loop(0, TT, step, h_scr[...], unroll=unroll)
    h_scr[...] = h_final

    # hT relies on the constant block index along the time axis (output-block
    # residency) plus this conditional final write.
    @pl.when(c == pl.num_programs(1) - 1)
    def _():
        hT_ref[...] = h_final.astype(hT_ref.dtype)


# ----------------------------------------------------------------------------
# Wrappers
# ----------------------------------------------------------------------------
def matmul_bias(x, w, b, out_dtype=jnp.float32):
    """Tiled x @ w + b.  x: (M, K), w: (K, N), b: (N,)."""
    M, K = x.shape
    Kw, N = w.shape
    assert K == Kw
    M_p, K_p, N_p = _round_up(M, 128), _round_up(K, 128), _round_up(N, 128)
    if M_p != M or K_p != K:
        x = jnp.pad(x, ((0, M_p - M), (0, K_p - K)))
    if K_p != K or N_p != N:
        w = jnp.pad(w, ((0, K_p - K), (0, N_p - N)))
    if N_p != N:
        b = jnp.pad(b, ((0, N_p - N),))

    tm = _pick_tile(M_p)
    tn = _pick_tile(N_p)      # 256/512 multiples only: full 2x256^2 MXU occupancy
    tk = _pick_tile(K_p)
    grid = (M_p // tm, N_p // tn, K_p // tk)

    out = pl.pallas_call(
        _matmul_bias_kernel,
        out_shape=jax.ShapeDtypeStruct((M_p, N_p), out_dtype),
        grid=grid,
        in_specs=[
            pl.BlockSpec((tm, tk), lambda i, j, k: (i, k)),
            pl.BlockSpec((tk, tn), lambda i, j, k: (k, j)),
            pl.BlockSpec((1, tn), lambda i, j, k: (0, j)),
        ],
        out_specs=pl.BlockSpec((tm, tn), lambda i, j, k: (i, j)),
        scratch_shapes=[pltpu.VMEM((tm, tn), jnp.float32)],
        compiler_params=pltpu.CompilerParams(
            dimension_semantics=("parallel", "parallel", "arbitrary")),
    )(x, w, b.reshape(1, -1))

    if M_p != M or N_p != N:
        out = out[:M, :N]
    return out


def gru_recurrent(gi_tbg, w_hh_t, b_hh_n, h0, tt, nb):
    """gi_tbg: (T, B_pad, 3H) bf16 precomputed gates (time-major).

    Returns (y: (T, B_pad, H) bf16, h_T: (B_pad, H) f32).
    """
    T, Bp, G3 = gi_tbg.shape
    H = h0.shape[-1]
    bb = Bp // nb

    # Explicit VMEM budget (matters on v7x: 64 MiB physical / 32 MiB scoped default).
    est = (2 * (tt * bb * G3 * 2) + 2 * (tt * bb * H * 2)
           + 2 * (H * G3 * 2) + 4 * bb * H * 4)
    vmem_limit = None
    if est > 12 * 1024 * 1024:
        vmem_limit = min(max(2 * est, 32 * 1024 * 1024), 64 * 1024 * 1024)

    y, hT = pl.pallas_call(
        _gru_recurrent_kernel,
        out_shape=(
            jax.ShapeDtypeStruct((T, Bp, H), jnp.bfloat16),
            jax.ShapeDtypeStruct((Bp, H), jnp.float32),
        ),
        grid=(nb, T // tt),
        in_specs=[
            pl.BlockSpec((tt, bb, G3), lambda b, c: (c, b, 0)),
            pl.BlockSpec((H, G3), lambda b, c: (0, 0)),
            pl.BlockSpec((1, H), lambda b, c: (0, 0)),
            pl.BlockSpec((bb, H), lambda b, c: (b, 0)),
        ],
        out_specs=(
            pl.BlockSpec((tt, bb, H), lambda b, c: (c, b, 0)),
            pl.BlockSpec((bb, H), lambda b, c: (b, 0)),
        ),
        scratch_shapes=[pltpu.VMEM((bb, H), jnp.float32)],
        compiler_params=pltpu.CompilerParams(
            dimension_semantics=("parallel", "arbitrary"),   # time axis is sequential
            vmem_limit_bytes=vmem_limit),
    )(gi_tbg, w_hh_t, b_hh_n.reshape(1, -1), h0)
    return y, hT


@partial(jax.jit, static_argnames=("hidden_dim", "vocab_size"))
def gru_language_model_forward(params, input_ids, hidden=None, *,
                               hidden_dim, vocab_size):
    """Matches GRULanguageModel.forward (eval mode).

    input_ids: (B, T) int32.
    Returns (logits (B, T, vocab) f32, hidden (num_layers, B, hidden) f32).
    """
    B, T = input_ids.shape
    L = len(params["gru"])
    H_pad = params["gru"][0]["w_hh_t"].shape[0]

    # Pad batch to a multiple of 16 (bf16 sublane pack) so y stores / next-layer
    # gi loads are fully packed.
    B_pad = _round_up(max(B, 1), 16)
    ids = input_ids
    if B_pad != B:
        ids = jnp.pad(input_ids, ((0, B_pad - B), (0, 0)))

    # Embedding gather, directly TIME-MAJOR (glue op in plain JAX; pad row = 0).
    x = params["embedding"][ids.T]                        # (T, B_pad, E_pad) bf16

    if hidden is None:
        h0_all = jnp.zeros((L, B_pad, H_pad), jnp.float32)
    else:
        h0_all = hidden.astype(jnp.float32)
        h0_all = jnp.pad(h0_all, ((0, 0), (0, B_pad - B),
                                  (0, H_pad - hidden.shape[-1])))

    # Split the batch across 2 cores (v7x megacore) when each half stays >= 16.
    nb = 2 if (B_pad % 32 == 0) else 1
    tt = _pick_time_chunk(T, B_pad // nb, H_pad)

    new_hidden = []
    for layer in range(L):
        p = params["gru"][layer]
        in_dim = x.shape[-1]
        # Hoisted input projection for ALL timesteps: one big MXU matmul.
        # Emitted in bf16 to halve HBM traffic of the largest streamed tensor.
        gi = matmul_bias(x.reshape(T * B_pad, in_dim), p["w_ih_t"], p["b_gates"],
                         out_dtype=jnp.bfloat16)
        gi = gi.reshape(T, B_pad, 3 * H_pad)
        # Recurrent part only: h @ W_hh + gate nonlinearities, time-chunked.
        x, hT = gru_recurrent(gi, p["w_hh_t"], p["b_hh_n"], h0_all[layer], tt, nb)
        new_hidden.append(hT)
        # Inter-layer dropout: identity in eval mode.
    hidden_out = jnp.stack(new_hidden, axis=0)            # (L, B_pad, H_pad)

    # Dropout after GRU: identity in eval mode.
    # Small (T,B,H)->(B,T,H) transpose so the big logits tensor needs no transpose.
    feats = jnp.transpose(x, (1, 0, 2)).reshape(B_pad * T, H_pad)
    logits = matmul_bias(feats, params["fc_w_t"], params["fc_b"],
                         out_dtype=jnp.float32)
    logits = logits.reshape(B_pad, T, -1)                 # (B_pad, T, V_pad)

    logits = logits[:B, :, :vocab_size]
    hidden_out = hidden_out[:, :B, :hidden_dim]
    return logits, hidden_out


# ----------------------------------------------------------------------------
# Parameter construction (PyTorch-style shapes/init) + kernel-friendly packing
# ----------------------------------------------------------------------------
def init_params(key, vocab_size, embed_dim, hidden_dim, num_layers, pad_token_id):
    """Logical (unpadded, PyTorch-layout) parameters."""
    keys = jax.random.split(key, 3 + 4 * num_layers)
    ki = iter(keys)

    emb = jax.random.normal(next(ki), (vocab_size, embed_dim), jnp.float32)
    emb = emb.at[pad_token_id].set(0.0)                  # padding_idx row is zero

    bound = 1.0 / jnp.sqrt(hidden_dim)
    gru_layers = []
    for layer in range(num_layers):
        in_dim = embed_dim if layer == 0 else hidden_dim
        gru_layers.append({
            "w_ih": jax.random.uniform(next(ki), (3 * hidden_dim, in_dim),
                                       jnp.float32, -bound, bound),
            "w_hh": jax.random.uniform(next(ki), (3 * hidden_dim, hidden_dim),
                                       jnp.float32, -bound, bound),
            "b_ih": jax.random.uniform(next(ki), (3 * hidden_dim,),
                                       jnp.float32, -bound, bound),
            "b_hh": jax.random.uniform(next(ki), (3 * hidden_dim,),
                                       jnp.float32, -bound, bound),
        })

    fc_w = jax.random.uniform(next(ki), (vocab_size, hidden_dim),
                              jnp.float32, -bound, bound)
    fc_b = jax.random.uniform(next(ki), (vocab_size,),
                              jnp.float32, -bound, bound)
    return {"embedding": emb, "gru": gru_layers, "fc_w": fc_w, "fc_b": fc_b}


def prepare_params(raw, lane=128):
    """Zero-pad every feature dim to a multiple of 128, transpose, cast matmul
    operands to bf16.  Zero padding preserves the forward semantics exactly."""
    V, E = raw["embedding"].shape
    H = raw["gru"][0]["w_hh"].shape[1]
    E_pad, H_pad, V_pad = _round_up(E, lane), _round_up(H, lane), _round_up(V, lane)

    def pad_gate_mat(w, in_dim, in_pad):
        w3 = w.reshape(3, H, in_dim)
        w3 = jnp.pad(w3, ((0, 0), (0, H_pad - H), (0, in_pad - in_dim)))
        return w3.reshape(3 * H_pad, in_pad)

    def pad_gate_vec(b):
        b3 = jnp.pad(b.reshape(3, H), ((0, 0), (0, H_pad - H)))
        return b3.reshape(3 * H_pad)

    emb = jnp.pad(raw["embedding"], ((0, 0), (0, E_pad - E)))

    gru_layers = []
    for layer, lp in enumerate(raw["gru"]):
        in_dim = lp["w_ih"].shape[1]
        in_pad = E_pad if layer == 0 else H_pad
        w_ih = pad_gate_mat(lp["w_ih"], in_dim, in_pad)          # (3H_pad, in_pad)
        w_hh = pad_gate_mat(lp["w_hh"], H, H_pad)                # (3H_pad, H_pad)
        b_ih = pad_gate_vec(lp["b_ih"])
        b_hh = pad_gate_vec(lp["b_hh"])
        # Pre-sum the r/z hidden biases into the hoisted input-projection bias;
        # keep the n-gate hidden bias separate (applied inside r*(h@W_hn+b_hn)).
        b_gates = jnp.concatenate(
            [b_ih[:2 * H_pad] + b_hh[:2 * H_pad], b_ih[2 * H_pad:]])
        gru_layers.append({
            "w_ih_t": w_ih.T.astype(jnp.bfloat16),               # (in_pad, 3H_pad)
            "w_hh_t": w_hh.T.astype(jnp.bfloat16),               # (H_pad, 3H_pad)
            "b_gates": b_gates.astype(jnp.float32),              # (3H_pad,)
            "b_hh_n": b_hh[2 * H_pad:].astype(jnp.float32),      # (H_pad,)
        })

    fc_w = jnp.pad(raw["fc_w"], ((0, V_pad - V), (0, H_pad - H)))
    fc_b = jnp.pad(raw["fc_b"], ((0, V_pad - V),))
    return {"embedding": emb.astype(jnp.bfloat16),
            "gru": gru_layers,
            "fc_w_t": fc_w.T.astype(jnp.bfloat16),
            "fc_b": fc_b.astype(jnp.float32)}


# ----------------------------------------------------------------------------
# Pure-JAX reference (mirrors the kernels' bf16-matmul / f32-gate numerics)
# ----------------------------------------------------------------------------
def reference_forward(params, input_ids, hidden=None, *, hidden_dim, vocab_size):
    B, T = input_ids.shape
    L = len(params["gru"])
    H_pad = params["gru"][0]["w_hh_t"].shape[0]
    x = params["embedding"][jnp.transpose(input_ids)]     # (T, B, E_pad) bf16
    if hidden is None:
        h_all = jnp.zeros((L, B, H_pad), jnp.float32)
    else:
        h_all = jnp.pad(hidden.astype(jnp.float32),
                        ((0, 0), (0, 0), (0, H_pad - hidden.shape[-1])))
    new_hidden = []
    for layer in range(L):
        p = params["gru"][layer]
        gi_all = (jnp.dot(x.reshape(T * B, -1), p["w_ih_t"],
                          preferred_element_type=jnp.float32)
                  + p["b_gates"]).astype(jnp.bfloat16).reshape(T, B, 3 * H_pad)
        h = h_all[layer]
        outs = []
        for t in range(T):
            gi = gi_all[t].astype(jnp.float32)
            gh = jnp.dot(h.astype(jnp.bfloat16), p["w_hh_t"],
                         preferred_element_type=jnp.float32)
            r = jax.nn.sigmoid(gi[:, :H_pad] + gh[:, :H_pad])
            z = jax.nn.sigmoid(gi[:, H_pad:2 * H_pad] + gh[:, H_pad:2 * H_pad])
            n = jnp.tanh(gi[:, 2 * H_pad:] + r * (gh[:, 2 * H_pad:] + p["b_hh_n"]))
            h = (1.0 - z) * n + z * h
            outs.append(h.astype(jnp.bfloat16))
        x = jnp.stack(outs, axis=0)                       # (T, B, H_pad) bf16
        new_hidden.append(h)
    feats = jnp.transpose(x, (1, 0, 2)).reshape(B * T, H_pad)
    logits = (jnp.dot(feats, params["fc_w_t"], preferred_element_type=jnp.float32)
              + params["fc_b"]).reshape(B, T, -1)
    return (logits[:, :, :vocab_size],
            jnp.stack(new_hidden, axis=0)[:, :, :hidden_dim])


# ----------------------------------------------------------------------------
if __name__ == "__main__":
    vocab_size = 128
    embed_dim = 32
    hidden_dim = 32
    num_layers = 2
    pad_token_id = 0
    batch, seq = 2, 8

    key = jax.random.PRNGKey(0)
    pkey, ikey = jax.random.split(key)
    raw_params = init_params(pkey, vocab_size, embed_dim, hidden_dim,
                             num_layers, pad_token_id)
    params = prepare_params(raw_params)
    input_ids = jax.random.randint(ikey, (batch, seq), 0, vocab_size,
                                   dtype=jnp.int32)

    logits, hidden = gru_language_model_forward(
        params, input_ids, hidden_dim=hidden_dim, vocab_size=vocab_size)
    jax.block_until_ready((logits, hidden))

    assert logits.shape == (batch, seq, vocab_size)
    assert hidden.shape == (num_layers, batch, hidden_dim)

    ref_logits, ref_hidden = reference_forward(
        params, input_ids, hidden_dim=hidden_dim, vocab_size=vocab_size)
    assert jnp.allclose(logits, ref_logits, atol=1e-2, rtol=1e-2)
    assert jnp.allclose(hidden, ref_hidden, atol=1e-2, rtol=1e-2)

    print("KERNEL_OK")
</pallas_src>

<mosaic_0001>
module attributes {stable_mosaic.version = 11 : i64} {
  func.func @_matmul_bias_kernel(%arg0: i32, %arg1: i32, %arg2: i32, %arg3: memref<128x128xbf16, #tpu.memory_space<vmem>>, %arg4: memref<128x128xbf16, #tpu.memory_space<vmem>>, %arg5: memref<1x128xf32, #tpu.memory_space<vmem>>, %arg6: memref<128x128xbf16, #tpu.memory_space<vmem>>, %arg7: memref<128x128xf32, #tpu.memory_space<vmem>>) attributes {dimension_semantics = [#tpu.dimension_semantics<parallel>, #tpu.dimension_semantics<parallel>, #tpu.dimension_semantics<arbitrary>], iteration_bounds = array<i64: 1, 3, 1>, scalar_prefetch = 0 : i64, scratch_operands = 1 : i64, tpu.core_type = #tpu.core_type<tc>, window_params = [{transform_indices = @transform_0, window_bounds = array<i64: 128, 128>}, {transform_indices = @transform_1, window_bounds = array<i64: 128, 128>}, {transform_indices = @transform_2, window_bounds = array<i64: 1, 128>}, {transform_indices = @transform_3, window_bounds = array<i64: 128, 128>}]} {
    %c0_i32 = arith.constant 0 : i32
    %0 = arith.cmpi eq, %arg2, %c0_i32 : i32
    %1 = arith.extui %0 : i1 to i32
    %c0_i32_0 = arith.constant 0 : i32
    %2 = arith.cmpi ne, %1, %c0_i32_0 : i32
    scf.if %2 {
      %cst_10 = arith.constant 0.000000e+00 : f32
      %12 = vector.broadcast %cst_10 : f32 to vector<128x128xf32>
      %c0_11 = arith.constant 0 : index
      %c0_12 = arith.constant 0 : index
      %13 = vector.load %arg7[%c0_11, %c0_12] : memref<128x128xf32, #tpu.memory_space<vmem>>, vector<128x128xf32>
      tpu.vector_store %arg7[%c0_11, %c0_12], %12 {strides = array<i32>} : memref<128x128xf32, #tpu.memory_space<vmem>>, vector<128x128xf32>,
    } else {
    }
    %c0 = arith.constant 0 : index
    %c0_1 = arith.constant 0 : index
    %3 = vector.load %arg7[%c0, %c0_1] : memref<128x128xf32, #tpu.memory_space<vmem>>, vector<128x128xf32>
    %c0_2 = arith.constant 0 : index
    %c0_3 = arith.constant 0 : index
    %4 = vector.load %arg3[%c0_2, %c0_3] : memref<128x128xbf16, #tpu.memory_space<vmem>>, vector<128x128xbf16>
    %c0_4 = arith.constant 0 : index
    %c0_5 = arith.constant 0 : index
    %5 = vector.load %arg4[%c0_4, %c0_5] : memref<128x128xbf16, #tpu.memory_space<vmem>>, vector<128x128xbf16>
    %cst = arith.constant dense<0.000000e+00> : vector<128x128xf32>
    %6 = tpu.matmul %4, %5, %cst {dimension_numbers = #tpu.dot_dimension_numbers<[1], [0], [0], [1], [0, 0, 1, 1], [], []>} : vector<128x128xbf16>, vector<128x128xbf16>, vector<128x128xf32> -> vector<128x128xf32>
    %7 = arith.addf %3, %6 : vector<128x128xf32>
    %c0_6 = arith.constant 0 : index
    %c0_7 = arith.constant 0 : index
    %8 = vector.load %arg7[%c0_6, %c0_7] : memref<128x128xf32, #tpu.memory_space<vmem>>, vector<128x128xf32>
    tpu.vector_store %arg7[%c0_6, %c0_7], %7 {strides = array<i32>} : memref<128x128xf32, #tpu.memory_space<vmem>>, vector<128x128xf32>,
    %c0_i32_8 = arith.constant 0 : i32
    %9 = arith.cmpi eq, %arg2, %c0_i32_8 : i32
    %10 = arith.extui %9 : i1 to i32
    %c0_i32_9 = arith.constant 0 : i32
    %11 = arith.cmpi ne, %10, %c0_i32_9 : i32
    scf.if %11 {
      %c0_10 = arith.constant 0 : index
      %c0_11 = arith.constant 0 : index
      %12 = vector.load %arg7[%c0_10, %c0_11] : memref<128x128xf32, #tpu.memory_space<vmem>>, vector<128x128xf32>
      %c0_12 = arith.constant 0 : index
      %c0_13 = arith.constant 0 : index
      %13 = vector.load %arg5[%c0_12, %c0_13] : memref<1x128xf32, #tpu.memory_space<vmem>>, vector<1x128xf32>
      %14 = vector.broadcast %13 : vector<1x128xf32> to vector<128x128xf32>
      %15 = arith.addf %12, %14 : vector<128x128xf32>
      %16 = arith.truncf %15 : vector<128x128xf32> to vector<128x128xbf16>
      %c0_14 = arith.constant 0 : index
      %c0_15 = arith.constant 0 : index
      %17 = vector.load %arg6[%c0_14, %c0_15] : memref<128x128xbf16, #tpu.memory_space<vmem>>, vector<128x128xbf16>
      tpu.vector_store %arg6[%c0_14, %c0_15], %16 {strides = array<i32>} : memref<128x128xbf16, #tpu.memory_space<vmem>>, vector<128x128xbf16>,
    } else {
    }
    return
  }
  func.func @transform_0(%arg0: i32, %arg1: i32, %arg2: i32) -> (i32, i32) {
    %c0_i32 = arith.constant 0 : i32
    return %arg0, %arg2 : i32, i32
  }
  func.func @transform_1(%arg0: i32, %arg1: i32, %arg2: i32) -> (i32, i32) {
    %c0_i32 = arith.constant 0 : i32
    return %arg2, %arg1 : i32, i32
  }
  func.func @transform_2(%arg0: i32, %arg1: i32, %arg2: i32) -> (i32, i32) {
    %c0_i32 = arith.constant 0 : i32
    %c0_i32_0 = arith.constant 0 : i32
    return %c0_i32, %arg1 : i32, i32
  }
  func.func @transform_3(%arg0: i32, %arg1: i32, %arg2: i32) -> (i32, i32) {
    %c0_i32 = arith.constant 0 : i32
    return %arg0, %arg1 : i32, i32
  }
}

module attributes {stable_mosaic.version = 11 : i64} {
  func.func @_gru_recurrent_kernel(%arg0: i32, %arg1: i32, %arg2: memref<8x16x384xbf16, #tpu.memory_space<vmem>>, %arg3: memref<128x384xbf16, #tpu.memory_space<vmem>>, %arg4: memref<1x128xf32, #tpu.memory_space<vmem>>, %arg5: memref<16x128xf32, #tpu.memory_space<vmem>>, %arg6: memref<8x16x128xbf16, #tpu.memory_space<vmem>>, %arg7: memref<16x128xf32, #tpu.memory_space<vmem>>, %arg8: memref<16x128xf32, #tpu.memory_space<vmem>>) attributes {dimension_semantics = [#tpu.dimension_semantics<parallel>, #tpu.dimension_semantics<arbitrary>], iteration_bounds = array<i64: 1, 1>, scalar_prefetch = 0 : i64, scratch_operands = 1 : i64, tpu.core_type = #tpu.core_type<tc>, window_params = [{transform_indices = @transform_0, window_bounds = array<i64: 8, 16, 384>}, {pipeline_mode = #tpu.pipeline_mode<synchronous>, transform_indices = @transform_1, window_bounds = array<i64: 128, 384>}, {pipeline_mode = #tpu.pipeline_mode<synchronous>, transform_indices = @transform_2, window_bounds = array<i64: 1, 128>}, {transform_indices = @transform_3, window_bounds = array<i64: 16, 128>}, {transform_indices = @transform_4, window_bounds = array<i64: 8, 16, 128>}, {transform_indices = @transform_5, window_bounds = array<i64: 16, 128>}]} {
    %c0_i32 = arith.constant 0 : i32
    %0 = arith.cmpi eq, %arg1, %c0_i32 : i32
    %1 = arith.extui %0 : i1 to i32
    %c0_i32_0 = arith.constant 0 : i32
    %2 = arith.cmpi ne, %1, %c0_i32_0 : i32
    scf.if %2 {
      %c0_74 = arith.constant 0 : index
      %c0_75 = arith.constant 0 : index
      %316 = vector.load %arg5[%c0_74, %c0_75] : memref<16x128xf32, #tpu.memory_space<vmem>>, vector<16x128xf32>
      %c0_76 = arith.constant 0 : index
      %c0_77 = arith.constant 0 : index
      %317 = vector.load %arg8[%c0_76, %c0_77] : memref<16x128xf32, #tpu.memory_space<vmem>>, vector<16x128xf32>
      tpu.vector_store %arg8[%c0_76, %c0_77], %316 {strides = array<i32>} : memref<16x128xf32, #tpu.memory_space<vmem>>, vector<16x128xf32>,
    } else {
    }
    %c0 = arith.constant 0 : index
    %c0_1 = arith.constant 0 : index
    %3 = vector.load %arg3[%c0, %c0_1] : memref<128x384xbf16, #tpu.memory_space<vmem>>, vector<128x384xbf16>
    %c0_2 = arith.constant 0 : index
    %c0_3 = arith.constant 0 : index
    %4 = vector.load %arg4[%c0_2, %c0_3] : memref<1x128xf32, #tpu.memory_space<vmem>>, vector<1x128xf32>
    %5 = vector.shape_cast %4 : vector<1x128xf32> to vector<1x128xf32>
    %6 = vector.broadcast %5 : vector<1x128xf32> to vector<16x128xf32>
    %c0_4 = arith.constant 0 : index
    %c0_5 = arith.constant 0 : index
    %7 = vector.load %arg8[%c0_4, %c0_5] : memref<16x128xf32, #tpu.memory_space<vmem>>, vector<16x128xf32>
    %c0_i32_6 = arith.constant 0 : i32
    %8 = arith.index_cast %c0_i32_6 : i32 to index
    %c0_7 = arith.constant 0 : index
    %c0_8 = arith.constant 0 : index
    %9 = vector.load %arg2[%8, %c0_7, %c0_8] : memref<8x16x384xbf16, #tpu.memory_space<vmem>>, vector<1x16x384xbf16>
    %10 = vector.shape_cast %9 : vector<1x16x384xbf16> to vector<16x384xbf16>
    %11 = arith.extf %10 : vector<16x384xbf16> to vector<16x384xf32>
    %12 = arith.truncf %7 : vector<16x128xf32> to vector<16x128xbf16>
    %cst = arith.constant dense<0.000000e+00> : vector<16x384xf32>
    %13 = tpu.matmul %12, %3, %cst {dimension_numbers = #tpu.dot_dimension_numbers<[1], [0], [0], [1], [0, 0, 1, 1], [], []>} : vector<16x128xbf16>, vector<128x384xbf16>, vector<16x384xf32> -> vector<16x384xf32>
    %14 = vector.extract_strided_slice %11 {offsets = [0, 0], sizes = [16, 128], strides = [1, 1]} : vector<16x384xf32> to vector<16x128xf32>
    %15 = vector.extract_strided_slice %11 {offsets = [0, 128], sizes = [16, 128], strides = [1, 1]} : vector<16x384xf32> to vector<16x128xf32>
    %16 = vector.extract_strided_slice %11 {offsets = [0, 256], sizes = [16, 128], strides = [1, 1]} : vector<16x384xf32> to vector<16x128xf32>
    %17 = vector.extract_strided_slice %13 {offsets = [0, 0], sizes = [16, 128], strides = [1, 1]} : vector<16x384xf32> to vector<16x128xf32>
    %18 = vector.extract_strided_slice %13 {offsets = [0, 128], sizes = [16, 128], strides = [1, 1]} : vector<16x384xf32> to vector<16x128xf32>
    %19 = vector.extract_strided_slice %13 {offsets = [0, 256], sizes = [16, 128], strides = [1, 1]} : vector<16x384xf32> to vector<16x128xf32>
    %20 = arith.addf %14, %17 : vector<16x128xf32>
    %21 = arith.negf %20 : vector<16x128xf32>
    %22 = math.exp %21 : vector<16x128xf32>
    %cst_9 = arith.constant 1.000000e+00 : f32
    %23 = vector.broadcast %cst_9 : f32 to vector<16x128xf32>
    %24 = arith.addf %23, %22 : vector<16x128xf32>
    %25 = arith.divf %23, %24 : vector<16x128xf32>
    %26 = arith.addf %15, %18 : vector<16x128xf32>
    %27 = arith.negf %26 : vector<16x128xf32>
    %28 = math.exp %27 : vector<16x128xf32>
    %cst_10 = arith.constant 1.000000e+00 : f32
    %29 = vector.broadcast %cst_10 : f32 to vector<16x128xf32>
    %30 = arith.addf %29, %28 : vector<16x128xf32>
    %31 = arith.divf %29, %30 : vector<16x128xf32>
    %32 = arith.addf %19, %6 : vector<16x128xf32>
    %33 = arith.mulf %25, %32 : vector<16x128xf32>
    %34 = arith.addf %16, %33 : vector<16x128xf32>
    %35 = math.tanh %34 : vector<16x128xf32>
    %cst_11 = arith.constant 1.000000e+00 : f32
    %36 = vector.broadcast %cst_11 : f32 to vector<16x128xf32>
    %37 = arith.subf %36, %31 : vector<16x128xf32>
    %38 = arith.mulf %37, %35 : vector<16x128xf32>
    %39 = arith.mulf %31, %7 : vector<16x128xf32>
    %40 = arith.addf %38, %39 : vector<16x128xf32>
    %41 = arith.truncf %40 : vector<16x128xf32> to vector<16x128xbf16>
    %42 = arith.index_cast %c0_i32_6 : i32 to index
    %c0_12 = arith.constant 0 : index
    %c0_13 = arith.constant 0 : index
    %43 = vector.load %arg6[%42, %c0_12, %c0_13] : memref<8x16x128xbf16, #tpu.memory_space<vmem>>, vector<1x16x128xbf16>
    %44 = vector.shape_cast %43 : vector<1x16x128xbf16> to vector<16x128xbf16>
    %45 = vector.shape_cast %41 : vector<16x128xbf16> to vector<1x16x128xbf16>
    tpu.vector_store %arg6[%42, %c0_12, %c0_13], %45 {strides = array<i32>} : memref<8x16x128xbf16, #tpu.memory_space<vmem>>, vector<1x16x128xbf16>,
    %c1_i32 = arith.constant 1 : i32
    %46 = arith.index_cast %c1_i32 : i32 to index
    %c0_14 = arith.constant 0 : index
    %c0_15 = arith.constant 0 : index
    %47 = vector.load %arg2[%46, %c0_14, %c0_15] : memref<8x16x384xbf16, #tpu.memory_space<vmem>>, vector<1x16x384xbf16>
    %48 = vector.shape_cast %47 : vector<1x16x384xbf16> to vector<16x384xbf16>
    %49 = arith.extf %48 : vector<16x384xbf16> to vector<16x384xf32>
    %50 = arith.truncf %40 : vector<16x128xf32> to vector<16x128xbf16>
    %cst_16 = arith.constant dense<0.000000e+00> : vector<16x384xf32>
    %51 = tpu.matmul %50, %3, %cst_16 {dimension_numbers = #tpu.dot_dimension_numbers<[1], [0], [0], [1], [0, 0, 1, 1], [], []>} : vector<16x128xbf16>, vector<128x384xbf16>, vector<16x384xf32> -> vector<16x384xf32>
    %52 = vector.extract_strided_slice %49 {offsets = [0, 0], sizes = [16, 128], strides = [1, 1]} : vector<16x384xf32> to vector<16x128xf32>
    %53 = vector.extract_strided_slice %49 {offsets = [0, 128], sizes = [16, 128], strides = [1, 1]} : vector<16x384xf32> to vector<16x128xf32>
    %54 = vector.extract_strided_slice %49 {offsets = [0, 256], sizes = [16, 128], strides = [1, 1]} : vector<16x384xf32> to vector<16x128xf32>
    %55 = vector.extract_strided_slice %51 {offsets = [0, 0], sizes = [16, 128], strides = [1, 1]} : vector<16x384xf32> to vector<16x128xf32>
    %56 = vector.extract_strided_slice %51 {offsets = [0, 128], sizes = [16, 128], strides = [1, 1]} : vector<16x384xf32> to vector<16x128xf32>
    %57 = vector.extract_strided_slice %51 {offsets = [0, 256], sizes = [16, 128], strides = [1, 1]} : vector<16x384xf32> to vector<16x128xf32>
    %58 = arith.addf %52, %55 : vector<16x128xf32>
    %59 = arith.negf %58 : vector<16x128xf32>
    %60 = math.exp %59 : vector<16x128xf32>
    %cst_17 = arith.constant 1.000000e+00 : f32
    %61 = vector.broadcast %cst_17 : f32 to vector<16x128xf32>
    %62 = arith.addf %61, %60 : vector<16x128xf32>
    %63 = arith.divf %61, %62 : vector<16x128xf32>
    %64 = arith.addf %53, %56 : vector<16x128xf32>
    %65 = arith.negf %64 : vector<16x128xf32>
    %66 = math.exp %65 : vector<16x128xf32>
    %cst_18 = arith.constant 1.000000e+00 : f32
    %67 = vector.broadcast %cst_18 : f32 to vector<16x128xf32>
    %68 = arith.addf %67, %66 : vector<16x128xf32>
    %69 = arith.divf %67, %68 : vector<16x128xf32>
    %70 = arith.addf %57, %6 : vector<16x128xf32>
    %71 = arith.mulf %63, %70 : vector<16x128xf32>
    %72 = arith.addf %54, %71 : vector<16x128xf32>
    %73 = math.tanh %72 : vector<16x128xf32>
    %cst_19 = arith.constant 1.000000e+00 : f32
    %74 = vector.broadcast %cst_19 : f32 to vector<16x128xf32>
    %75 = arith.subf %74, %69 : vector<16x128xf32>
    %76 = arith.mulf %75, %73 : vector<16x128xf32>
    %77 = arith.mulf %69, %40 : vector<16x128xf32>
    %78 = arith.addf %76, %77 : vector<16x128xf32>
    %79 = arith.truncf %78 : vector<16x128xf32> to vector<16x128xbf16>
    %80 = arith.index_cast %c1_i32 : i32 to index
    %c0_20 = arith.constant 0 : index
    %c0_21 = arith.constant 0 : index
    %81 = vector.load %arg6[%80, %c0_20, %c0_21] : memref<8x16x128xbf16, #tpu.memory_space<vmem>>, vector<1x16x128xbf16>
    %82 = vector.shape_cast %81 : vector<1x16x128xbf16> to vector<16x128xbf16>
    %83 = vector.shape_cast %79 : vector<16x128xbf16> to vector<1x16x128xbf16>
    tpu.vector_store %arg6[%80, %c0_20, %c0_21], %83 {strides = array<i32>} : memref<8x16x128xbf16, #tpu.memory_space<vmem>>, vector<1x16x128xbf16>,
    %c2_i32 = arith.constant 2 : i32
    %84 = arith.index_cast %c2_i32 : i32 to index
    %c0_22 = arith.constant 0 : index
    %c0_23 = arith.constant 0 : index
    %85 = vector.load %arg2[%84, %c0_22, %c0_23] : memref<8x16x384xbf16, #tpu.memory_space<vmem>>, vector<1x16x384xbf16>
    %86 = vector.shape_cast %85 : vector<1x16x384xbf16> to vector<16x384xbf16>
    %87 = arith.extf %86 : vector<16x384xbf16> to vector<16x384xf32>
    %88 = arith.truncf %78 : vector<16x128xf32> to vector<16x128xbf16>
    %cst_24 = arith.constant dense<0.000000e+00> : vector<16x384xf32>
    %89 = tpu.matmul %88, %3, %cst_24 {dimension_numbers = #tpu.dot_dimension_numbers<[1], [0], [0], [1], [0, 0, 1, 1], [], []>} : vector<16x128xbf16>, vector<128x384xbf16>, vector<16x384xf32> -> vector<16x384xf32>
    %90 = vector.extract_strided_slice %87 {offsets = [0, 0], sizes = [16, 128], strides = [1, 1]} : vector<16x384xf32> to vector<16x128xf32>
    %91 = vector.extract_strided_slice %87 {offsets = [0, 128], sizes = [16, 128], strides = [1, 1]} : vector<16x384xf32> to vector<16x128xf32>
    %92 = vector.extract_strided_slice %87 {offsets = [0, 256], sizes = [16, 128], strides = [1, 1]} : vector<16x384xf32> to vector<16x128xf32>
    %93 = vector.extract_strided_slice %89 {offsets = [0, 0], sizes = [16, 128], strides = [1, 1]} : vector<16x384xf32> to vector<16x128xf32>
    %94 = vector.extract_strided_slice %89 {offsets = [0, 128], sizes = [16, 128], strides = [1, 1]} : vector<16x384xf32> to vector<16x128xf32>
    %95 = vector.extract_strided_slice %89 {offsets = [0, 256], sizes = [16, 128], strides = [1, 1]} : vector<16x384xf32> to vector<16x128xf32>
    %96 = arith.addf %90, %93 : vector<16x128xf32>
    %97 = arith.negf %96 : vector<16x128xf32>
    %98 = math.exp %97 : vector<16x128xf32>
    %cst_25 = arith.constant 1.000000e+00 : f32
    %99 = vector.broadcast %cst_25 : f32 to vector<16x128xf32>
    %100 = arith.addf %99, %98 : vector<16x128xf32>
    %101 = arith.divf %99, %100 : vector<16x128xf32>
    %102 = arith.addf %91, %94 : vector<16x128xf32>
    %103 = arith.negf %102 : vector<16x128xf32>
    %104 = math.exp %103 : vector<16x128xf32>
    %cst_26 = arith.constant 1.000000e+00 : f32
    %105 = vector.broadcast %cst_26 : f32 to vector<16x128xf32>
    %106 = arith.addf %105, %104 : vector<16x128xf32>
    %107 = arith.divf %105, %106 : vector<16x128xf32>
    %108 = arith.addf %95, %6 : vector<16x128xf32>
    %109 = arith.mulf %101, %108 : vector<16x128xf32>
    %110 = arith.addf %92, %109 : vector<16x128xf32>
    %111 = math.tanh %110 : vector<16x128xf32>
    %cst_27 = arith.constant 1.000000e+00 : f32
    %112 = vector.broadcast %cst_27 : f32 to vector<16x128xf32>
    %113 = arith.subf %112, %107 : vector<16x128xf32>
    %114 = arith.mulf %113, %111 : vector<16x128xf32>
    %115 = arith.mulf %107, %78 : vector<16x128xf32>
    %116 = arith.addf %114, %115 : vector<16x128xf32>
    %117 = arith.truncf %116 : vector<16x128xf32> to vector<16x128xbf16>
    %118 = arith.index_cast %c2_i32 : i32 to index
    %c0_28 = arith.constant 0 : index
    %c0_29 = arith.constant 0 : index
    %119 = vector.load %arg6[%118, %c0_28, %c0_29] : memref<8x16x128xbf16, #tpu.memory_space<vmem>>, vector<1x16x128xbf16>
    %120 = vector.shape_cast %119 : vector<1x16x128xbf16> to vector<16x128xbf16>
    %121 = vector.shape_cast %117 : vector<16x128xbf16> to vector<1x16x128xbf16>
    tpu.vector_store %arg6[%118, %c0_28, %c0_29], %121 {strides = array<i32>} : memref<8x16x128xbf16, #tpu.memory_space<vmem>>, vector<1x16x128xbf16>,
    %c3_i32 = arith.constant 3 : i32
    %122 = arith.index_cast %c3_i32 : i32 to index
    %c0_30 = arith.constant 0 : index
    %c0_31 = arith.constant 0 : index
    %123 = vector.load %arg2[%122, %c0_30, %c0_31] : memref<8x16x384xbf16, #tpu.memory_space<vmem>>, vector<1x16x384xbf16>
    %124 = vector.shape_cast %123 : vector<1x16x384xbf16> to vector<16x384xbf16>
    %125 = arith.extf %124 : vector<16x384xbf16> to vector<16x384xf32>
    %126 = arith.truncf %116 : vector<16x128xf32> to vector<16x128xbf16>
    %cst_32 = arith.constant dense<0.000000e+00> : vector<16x384xf32>
    %127 = tpu.matmul %126, %3, %cst_32 {dimension_numbers = #tpu.dot_dimension_numbers<[1], [0], [0], [1], [0, 0, 1, 1], [], []>} : vector<16x128xbf16>, vector<128x384xbf16>, vector<16x384xf32> -> vector<16x384xf32>
    %128 = vector.extract_strided_slice %125 {offsets = [0, 0], sizes = [16, 128], strides = [1, 1]} : vector<16x384xf32> to vector<16x128xf32>
    %129 = vector.extract_strided_slice %125 {offsets = [0, 128], sizes = [16, 128], strides = [1, 1]} : vector<16x384xf32> to vector<16x128xf32>
    %130 = vector.extract_strided_slice %125 {offsets = [0, 256], sizes = [16, 128], strides = [1, 1]} : vector<16x384xf32> to vector<16x128xf32>
    %131 = vector.extract_strided_slice %127 {offsets = [0, 0], sizes = [16, 128], strides = [1, 1]} : vector<16x384xf32> to vector<16x128xf32>
    %132 = vector.extract_strided_slice %127 {offsets = [0, 128], sizes = [16, 128], strides = [1, 1]} : vector<16x384xf32> to vector<16x128xf32>
    %133 = vector.extract_strided_slice %127 {offsets = [0, 256], sizes = [16, 128], strides = [1, 1]} : vector<16x384xf32> to vector<16x128xf32>
    %134 = arith.addf %128, %131 : vector<16x128xf32>
    %135 = arith.negf %134 : vector<16x128xf32>
    %136 = math.exp %135 : vector<16x128xf32>
    %cst_33 = arith.constant 1.000000e+00 : f32
    %137 = vector.broadcast %cst_33 : f32 to vector<16x128xf32>
    %138 = arith.addf %137, %136 : vector<16x128xf32>
    %139 = arith.divf %137, %138 : vector<16x128xf32>
    %140 = arith.addf %129, %132 : vector<16x128xf32>
    %141 = arith.negf %140 : vector<16x128xf32>
    %142 = math.exp %141 : vector<16x128xf32>
    %cst_34 = arith.constant 1.000000e+00 : f32
    %143 = vector.broadcast %cst_34 : f32 to vector<16x128xf32>
    %144 = arith.addf %143, %142 : vector<16x128xf32>
    %145 = arith.divf %143, %144 : vector<16x128xf32>
    %146 = arith.addf %133, %6 : vector<16x128xf32>
    %147 = arith.mulf %139, %146 : vector<16x128xf32>
    %148 = arith.addf %130, %147 : vector<16x128xf32>
    %149 = math.tanh %148 : vector<16x128xf32>
    %cst_35 = arith.constant 1.000000e+00 : f32
    %150 = vector.broadcast %cst_35 : f32 to vector<16x128xf32>
    %151 = arith.subf %150, %145 : vector<16x128xf32>
    %152 = arith.mulf %151, %149 : vector<16x128xf32>
    %153 = arith.mulf %145, %116 : vector<16x128xf32>
    %154 = arith.addf %152, %153 : vector<16x128xf32>
    %155 = arith.truncf %154 : vector<16x128xf32> to vector<16x128xbf16>
    %156 = arith.index_cast %c3_i32 : i32 to index
    %c0_36 = arith.constant 0 : index
    %c0_37 = arith.constant 0 : index
    %157 = vector.load %arg6[%156, %c0_36, %c0_37] : memref<8x16x128xbf16, #tpu.memory_space<vmem>>, vector<1x16x128xbf16>
    %158 = vector.shape_cast %157 : vector<1x16x128xbf16> to vector<16x128xbf16>
    %159 = vector.shape_cast %155 : vector<16x128xbf16> to vector<1x16x128xbf16>
    tpu.vector_store %arg6[%156, %c0_36, %c0_37], %159 {strides = array<i32>} : memref<8x16x128xbf16, #tpu.memory_space<vmem>>, vector<1x16x128xbf16>,
    %c4_i32 = arith.constant 4 : i32
    %160 = arith.index_cast %c4_i32 : i32 to index
    %c0_38 = arith.constant 0 : index
    %c0_39 = arith.constant 0 : index
    %161 = vector.load %arg2[%160, %c0_38, %c0_39] : memref<8x16x384xbf16, #tpu.memory_space<vmem>>, vector<1x16x384xbf16>
    %162 = vector.shape_cast %161 : vector<1x16x384xbf16> to vector<16x384xbf16>
    %163 = arith.extf %162 : vector<16x384xbf16> to vector<16x384xf32>
    %164 = arith.truncf %154 : vector<16x128xf32> to vector<16x128xbf16>
    %cst_40 = arith.constant dense<0.000000e+00> : vector<16x384xf32>
    %165 = tpu.matmul %164, %3, %cst_40 {dimension_numbers = #tpu.dot_dimension_numbers<[1], [0], [0], [1], [0, 0, 1, 1], [], []>} : vector<16x128xbf16>, vector<128x384xbf16>, vector<16x384xf32> -> vector<16x384xf32>
    %166 = vector.extract_strided_slice %163 {offsets = [0, 0], sizes = [16, 128], strides = [1, 1]} : vector<16x384xf32> to vector<16x128xf32>
    %167 = vector.extract_strided_slice %163 {offsets = [0, 128], sizes = [16, 128], strides = [1, 1]} : vector<16x384xf32> to vector<16x128xf32>
    %168 = vector.extract_strided_slice %163 {offsets = [0, 256], sizes = [16, 128], strides = [1, 1]} : vector<16x384xf32> to vector<16x128xf32>
    %169 = vector.extract_strided_slice %165 {offsets = [0, 0], sizes = [16, 128], strides = [1, 1]} : vector<16x384xf32> to vector<16x128xf32>
    %170 = vector.extract_strided_slice %165 {offsets = [0, 128], sizes = [16, 128], strides = [1, 1]} : vector<16x384xf32> to vector<16x128xf32>
    %171 = vector.extract_strided_slice %165 {offsets = [0, 256], sizes = [16, 128], strides = [1, 1]} : vector<16x384xf32> to vector<16x128xf32>
    %172 = arith.addf %166, %169 : vector<16x128xf32>
    %173 = arith.negf %172 : vector<16x128xf32>
    %174 = math.exp %173 : vector<16x128xf32>
    %cst_41 = arith.constant 1.000000e+00 : f32
    %175 = vector.broadcast %cst_41 : f32 to vector<16x128xf32>
    %176 = arith.addf %175, %174 : vector<16x128xf32>
    %177 = arith.divf %175, %176 : vector<16x128xf32>
    %178 = arith.addf %167, %170 : vector<16x128xf32>
    %179 = arith.negf %178 : vector<16x128xf32>
    %180 = math.exp %179 : vector<16x128xf32>
    %cst_42 = arith.constant 1.000000e+00 : f32
    %181 = vector.broadcast %cst_42 : f32 to vector<16x128xf32>
    %182 = arith.addf %181, %180 : vector<16x128xf32>
    %183 = arith.divf %181, %182 : vector<16x128xf32>
    %184 = arith.addf %171, %6 : vector<16x128xf32>
    %185 = arith.mulf %177, %184 : vector<16x128xf32>
    %186 = arith.addf %168, %185 : vector<16x128xf32>
    %187 = math.tanh %186 : vector<16x128xf32>
    %cst_43 = arith.constant 1.000000e+00 : f32
    %188 = vector.broadcast %cst_43 : f32 to vector<16x128xf32>
    %189 = arith.subf %188, %183 : vector<16x128xf32>
    %190 = arith.mulf %189, %187 : vector<16x128xf32>
    %191 = arith.mulf %183, %154 : vector<16x128xf32>
    %192 = arith.addf %190, %191 : vector<16x128xf32>
    %193 = arith.truncf %192 : vector<16x128xf32> to vector<16x128xbf16>
    %194 = arith.index_cast %c4_i32 : i32 to index
    %c0_44 = arith.constant 0 : index
    %c0_45 = arith.constant 0 : index
    %195 = vector.load %arg6[%194, %c0_44, %c0_45] : memref<8x16x128xbf16, #tpu.memory_space<vmem>>, vector<1x16x128xbf16>
    %196 = vector.shape_cast %195 : vector<1x16x128xbf16> to vector<16x128xbf16>
    %197 = vector.shape_cast %193 : vector<16x128xbf16> to vector<1x16x128xbf16>
    tpu.vector_store %arg6[%194, %c0_44, %c0_45], %197 {strides = array<i32>} : memref<8x16x128xbf16, #tpu.memory_space<vmem>>, vector<1x16x128xbf16>,
    %c5_i32 = arith.constant 5 : i32
    %198 = arith.index_cast %c5_i32 : i32 to index
    %c0_46 = arith.constant 0 : index
    %c0_47 = arith.constant 0 : index
    %199 = vector.load %arg2[%198, %c0_46, %c0_47] : memref<8x16x384xbf16, #tpu.memory_space<vmem>>, vector<1x16x384xbf16>
    %200 = vector.shape_cast %199 : vector<1x16x384xbf16> to vector<16x384xbf16>
    %201 = arith.extf %200 : vector<16x384xbf16> to vector<16x384xf32>
    %202 = arith.truncf %192 : vector<16x128xf32> to vector<16x128xbf16>
    %cst_48 = arith.constant dense<0.000000e+00> : vector<16x384xf32>
    %203 = tpu.matmul %202, %3, %cst_48 {dimension_numbers = #tpu.dot_dimension_numbers<[1], [0], [0], [1], [0, 0, 1, 1], [], []>} : vector<16x128xbf16>, vector<128x384xbf16>, vector<16x384xf32> -> vector<16x384xf32>
    %204 = vector.extract_strided_slice %201 {offsets = [0, 0], sizes = [16, 128], strides = [1, 1]} : vector<16x384xf32> to vector<16x128xf32>
    %205 = vector.extract_strided_slice %201 {offsets = [0, 128], sizes = [16, 128], strides = [1, 1]} : vector<16x384xf32> to vector<16x128xf32>
    %206 = vector.extract_strided_slice %201 {offsets = [0, 256], sizes = [16, 128], strides = [1, 1]} : vector<16x384xf32> to vector<16x128xf32>
    %207 = vector.extract_strided_slice %203 {offsets = [0, 0], sizes = [16, 128], strides = [1, 1]} : vector<16x384xf32> to vector<16x128xf32>
    %208 = vector.extract_strided_slice %203 {offsets = [0, 128], sizes = [16, 128], strides = [1, 1]} : vector<16x384xf32> to vector<16x128xf32>
    %209 = vector.extract_strided_slice %203 {offsets = [0, 256], sizes = [16, 128], strides = [1, 1]} : vector<16x384xf32> to vector<16x128xf32>
    %210 = arith.addf %204, %207 : vector<16x128xf32>
    %211 = arith.negf %210 : vector<16x128xf32>
    %212 = math.exp %211 : vector<16x128xf32>
    %cst_49 = arith.constant 1.000000e+00 : f32
    %213 = vector.broadcast %cst_49 : f32 to vector<16x128xf32>
    %214 = arith.addf %213, %212 : vector<16x128xf32>
    %215 = arith.divf %213, %214 : vector<16x128xf32>
    %216 = arith.addf %205, %208 : vector<16x128xf32>
    %217 = arith.negf %216 : vector<16x128xf32>
    %218 = math.exp %217 : vector<16x128xf32>
    %cst_50 = arith.constant 1.000000e+00 : f32
    %219 = vector.broadcast %cst_50 : f32 to vector<16x128xf32>
    %220 = arith.addf %219, %218 : vector<16x128xf32>
    %221 = arith.divf %219, %220 : vector<16x128xf32>
    %222 = arith.addf %209, %6 : vector<16x128xf32>
    %223 = arith.mulf %215, %222 : vector<16x128xf32>
    %224 = arith.addf %206, %223 : vector<16x128xf32>
    %225 = math.tanh %224 : vector<16x128xf32>
    %cst_51 = arith.constant 1.000000e+00 : f32
    %226 = vector.broadcast %cst_51 : f32 to vector<16x128xf32>
    %227 = arith.subf %226, %221 : vector<16x128xf32>
    %228 = arith.mulf %227, %225 : vector<16x128xf32>
    %229 = arith.mulf %221, %192 : vector<16x128xf32>
    %230 = arith.addf %228, %229 : vector<16x128xf32>
    %231 = arith.truncf %230 : vector<16x128xf32> to vector<16x128xbf16>
    %232 = arith.index_cast %c5_i32 : i32 to index
    %c0_52 = arith.constant 0 : index
    %c0_53 = arith.constant 0 : index
    %233 = vector.load %arg6[%232, %c0_52, %c0_53] : memref<8x16x128xbf16, #tpu.memory_space<vmem>>, vector<1x16x128xbf16>
    %234 = vector.shape_cast %233 : vector<1x16x128xbf16> to vector<16x128xbf16>
    %235 = vector.shape_cast %231 : vector<16x128xbf16> to vector<1x16x128xbf16>
    tpu.vector_store %arg6[%232, %c0_52, %c0_53], %235 {strides = array<i32>} : memref<8x16x128xbf16, #tpu.memory_space<vmem>>, vector<1x16x128xbf16>,
    %c6_i32 = arith.constant 6 : i32
    %236 = arith.index_cast %c6_i32 : i32 to index
    %c0_54 = arith.constant 0 : index
    %c0_55 = arith.constant 0 : index
    %237 = vector.load %arg2[%236, %c0_54, %c0_55] : memref<8x16x384xbf16, #tpu.memory_space<vmem>>, vector<1x16x384xbf16>
    %238 = vector.shape_cast %237 : vector<1x16x384xbf16> to vector<16x384xbf16>
    %239 = arith.extf %238 : vector<16x384xbf16> to vector<16x384xf32>
    %240 = arith.truncf %230 : vector<16x128xf32> to vector<16x128xbf16>
    %cst_56 = arith.constant dense<0.000000e+00> : vector<16x384xf32>
    %241 = tpu.matmul %240, %3, %cst_56 {dimension_numbers = #tpu.dot_dimension_numbers<[1], [0], [0], [1], [0, 0, 1, 1], [], []>} : vector<16x128xbf16>, vector<128x384xbf16>, vector<16x384xf32> -> vector<16x384xf32>
    %242 = vector.extract_strided_slice %239 {offsets = [0, 0], sizes = [16, 128], strides = [1, 1]} : vector<16x384xf32> to vector<16x128xf32>
    %243 = vector.extract_strided_slice %239 {offsets = [0, 128], sizes = [16, 128], strides = [1, 1]} : vector<16x384xf32> to vector<16x128xf32>
    %244 = vector.extract_strided_slice %239 {offsets = [0, 256], sizes = [16, 128], strides = [1, 1]} : vector<16x384xf32> to vector<16x128xf32>
    %245 = vector.extract_strided_slice %241 {offsets = [0, 0], sizes = [16, 128], strides = [1, 1]} : vector<16x384xf32> to vector<16x128xf32>
    %246 = vector.extract_strided_slice %241 {offsets = [0, 128], sizes = [16, 128], strides = [1, 1]} : vector<16x384xf32> to vector<16x128xf32>
    %247 = vector.extract_strided_slice %241 {offsets = [0, 256], sizes = [16, 128], strides = [1, 1]} : vector<16x384xf32> to vector<16x128xf32>
    %248 = arith.addf %242, %245 : vector<16x128xf32>
    %249 = arith.negf %248 : vector<16x128xf32>
    %250 = math.exp %249 : vector<16x128xf32>
    %cst_57 = arith.constant 1.000000e+00 : f32
    %251 = vector.broadcast %cst_57 : f32 to vector<16x128xf32>
    %252 = arith.addf %251, %250 : vector<16x128xf32>
    %253 = arith.divf %251, %252 : vector<16x128xf32>
    %254 = arith.addf %243, %246 : vector<16x128xf32>
    %255 = arith.negf %254 : vector<16x128xf32>
    %256 = math.exp %255 : vector<16x128xf32>
    %cst_58 = arith.constant 1.000000e+00 : f32
    %257 = vector.broadcast %cst_58 : f32 to vector<16x128xf32>
    %258 = arith.addf %257, %256 : vector<16x128xf32>
    %259 = arith.divf %257, %258 : vector<16x128xf32>
    %260 = arith.addf %247, %6 : vector<16x128xf32>
    %261 = arith.mulf %253, %260 : vector<16x128xf32>
    %262 = arith.addf %244, %261 : vector<16x128xf32>
    %263 = math.tanh %262 : vector<16x128xf32>
    %cst_59 = arith.constant 1.000000e+00 : f32
    %264 = vector.broadcast %cst_59 : f32 to vector<16x128xf32>
    %265 = arith.subf %264, %259 : vector<16x128xf32>
    %266 = arith.mulf %265, %263 : vector<16x128xf32>
    %267 = arith.mulf %259, %230 : vector<16x128xf32>
    %268 = arith.addf %266, %267 : vector<16x128xf32>
    %269 = arith.truncf %268 : vector<16x128xf32> to vector<16x128xbf16>
    %270 = arith.index_cast %c6_i32 : i32 to index
    %c0_60 = arith.constant 0 : index
    %c0_61 = arith.constant 0 : index
    %271 = vector.load %arg6[%270, %c0_60, %c0_61] : memref<8x16x128xbf16, #tpu.memory_space<vmem>>, vector<1x16x128xbf16>
    %272 = vector.shape_cast %271 : vector<1x16x128xbf16> to vector<16x128xbf16>
    %273 = vector.shape_cast %269 : vector<16x128xbf16> to vector<1x16x128xbf16>
    tpu.vector_store %arg6[%270, %c0_60, %c0_61], %273 {strides = array<i32>} : memref<8x16x128xbf16, #tpu.memory_space<vmem>>, vector<1x16x128xbf16>,
    %c7_i32 = arith.constant 7 : i32
    %274 = arith.index_cast %c7_i32 : i32 to index
    %c0_62 = arith.constant 0 : index
    %c0_63 = arith.constant 0 : index
    %275 = vector.load %arg2[%274, %c0_62, %c0_63] : memref<8x16x384xbf16, #tpu.memory_space<vmem>>, vector<1x16x384xbf16>
    %276 = vector.shape_cast %275 : vector<1x16x384xbf16> to vector<16x384xbf16>
    %277 = arith.extf %276 : vector<16x384xbf16> to vector<16x384xf32>
    %278 = arith.truncf %268 : vector<16x128xf32> to vector<16x128xbf16>
    %cst_64 = arith.constant dense<0.000000e+00> : vector<16x384xf32>
    %279 = tpu.matmul %278, %3, %cst_64 {dimension_numbers = #tpu.dot_dimension_numbers<[1], [0], [0], [1], [0, 0, 1, 1], [], []>} : vector<16x128xbf16>, vector<128x384xbf16>, vector<16x384xf32> -> vector<16x384xf32>
    %280 = vector.extract_strided_slice %277 {offsets = [0, 0], sizes = [16, 128], strides = [1, 1]} : vector<16x384xf32> to vector<16x128xf32>
    %281 = vector.extract_strided_slice %277 {offsets = [0, 128], sizes = [16, 128], strides = [1, 1]} : vector<16x384xf32> to vector<16x128xf32>
    %282 = vector.extract_strided_slice %277 {offsets = [0, 256], sizes = [16, 128], strides = [1, 1]} : vector<16x384xf32> to vector<16x128xf32>
    %283 = vector.extract_strided_slice %279 {offsets = [0, 0], sizes = [16, 128], strides = [1, 1]} : vector<16x384xf32> to vector<16x128xf32>
    %284 = vector.extract_strided_slice %279 {offsets = [0, 128], sizes = [16, 128], strides = [1, 1]} : vector<16x384xf32> to vector<16x128xf32>
    %285 = vector.extract_strided_slice %279 {offsets = [0, 256], sizes = [16, 128], strides = [1, 1]} : vector<16x384xf32> to vector<16x128xf32>
    %286 = arith.addf %280, %283 : vector<16x128xf32>
    %287 = arith.negf %286 : vector<16x128xf32>
    %288 = math.exp %287 : vector<16x128xf32>
    %cst_65 = arith.constant 1.000000e+00 : f32
    %289 = vector.broadcast %cst_65 : f32 to vector<16x128xf32>
    %290 = arith.addf %289, %288 : vector<16x128xf32>
    %291 = arith.divf %289, %290 : vector<16x128xf32>
    %292 = arith.addf %281, %284 : vector<16x128xf32>
    %293 = arith.negf %292 : vector<16x128xf32>
    %294 = math.exp %293 : vector<16x128xf32>
    %cst_66 = arith.constant 1.000000e+00 : f32
    %295 = vector.broadcast %cst_66 : f32 to vector<16x128xf32>
    %296 = arith.addf %295, %294 : vector<16x128xf32>
    %297 = arith.divf %295, %296 : vector<16x128xf32>
    %298 = arith.addf %285, %6 : vector<16x128xf32>
    %299 = arith.mulf %291, %298 : vector<16x128xf32>
    %300 = arith.addf %282, %299 : vector<16x128xf32>
    %301 = math.tanh %300 : vector<16x128xf32>
    %cst_67 = arith.constant 1.000000e+00 : f32
    %302 = vector.broadcast %cst_67 : f32 to vector<16x128xf32>
    %303 = arith.subf %302, %297 : vector<16x128xf32>
    %304 = arith.mulf %303, %301 : vector<16x128xf32>
    %305 = arith.mulf %297, %268 : vector<16x128xf32>
    %306 = arith.addf %304, %305 : vector<16x128xf32>
    %307 = arith.truncf %306 : vector<16x128xf32> to vector<16x128xbf16>
    %308 = arith.index_cast %c7_i32 : i32 to index
    %c0_68 = arith.constant 0 : index
    %c0_69 = arith.constant 0 : index
    %309 = vector.load %arg6[%308, %c0_68, %c0_69] : memref<8x16x128xbf16, #tpu.memory_space<vmem>>, vector<1x16x128xbf16>
    %310 = vector.shape_cast %309 : vector<1x16x128xbf16> to vector<16x128xbf16>
    %311 = vector.shape_cast %307 : vector<16x128xbf16> to vector<1x16x128xbf16>
    tpu.vector_store %arg6[%308, %c0_68, %c0_69], %311 {strides = array<i32>} : memref<8x16x128xbf16, #tpu.memory_space<vmem>>, vector<1x16x128xbf16>,
    %c8_i32 = arith.constant 8 : i32
    %c0_70 = arith.constant 0 : index
    %c0_71 = arith.constant 0 : index
    %312 = vector.load %arg8[%c0_70, %c0_71] : memref<16x128xf32, #tpu.memory_space<vmem>>, vector<16x128xf32>
    tpu.vector_store %arg8[%c0_70, %c0_71], %306 {strides = array<i32>} : memref<16x128xf32, #tpu.memory_space<vmem>>, vector<16x128xf32>,
    %c0_i32_72 = arith.constant 0 : i32
    %313 = arith.cmpi eq, %arg1, %c0_i32_72 : i32
    %314 = arith.extui %313 : i1 to i32
    %c0_i32_73 = arith.constant 0 : i32
    %315 = arith.cmpi ne, %314, %c0_i32_73 : i32
    scf.if %315 {
      %c0_74 = arith.constant 0 : index
      %c0_75 = arith.constant 0 : index
      %316 = vector.load %arg7[%c0_74, %c0_75] : memref<16x128xf32, #tpu.memory_space<vmem>>, vector<16x128xf32>
      tpu.vector_store %arg7[%c0_74, %c0_75], %306 {strides = array<i32>} : memref<16x128xf32, #tpu.memory_space<vmem>>, vector<16x128xf32>,
    } else {
    }
    return
  }
  func.func @transform_0(%arg0: i32, %arg1: i32) -> (i32, i32, i32) {
    %c0_i32 = arith.constant 0 : i32
    %c0_i32_0 = arith.constant 0 : i32
    return %arg1, %arg0, %c0_i32 : i32, i32, i32
  }
  func.func @transform_1(%arg0: i32, %arg1: i32) -> (i32, i32) {
    %c0_i32 = arith.constant 0 : i32
    %c0_i32_0 = arith.constant 0 : i32
    %c0_i32_1 = arith.constant 0 : i32
    return %c0_i32, %c0_i32_0 : i32, i32
  }
  func.func @transform_2(%arg0: i32, %arg1: i32) -> (i32, i32) {
    %c0_i32 = arith.constant 0 : i32
    %c0_i32_0 = arith.constant 0 : i32
    %c0_i32_1 = arith.constant 0 : i32
    return %c0_i32, %c0_i32_0 : i32, i32
  }
  func.func @transform_3(%arg0: i32, %arg1: i32) -> (i32, i32) {
    %c0_i32 = arith.constant 0 : i32
    %c0_i32_0 = arith.constant 0 : i32
    return %arg0, %c0_i32 : i32, i32
  }
  func.func @transform_4(%arg0: i32, %arg1: i32) -> (i32, i32, i32) {
    %c0_i32 = arith.constant 0 : i32
    %c0_i32_0 = arith.constant 0 : i32
    return %arg1, %arg0, %c0_i32 : i32, i32, i32
  }
  func.func @transform_5(%arg0: i32, %arg1: i32) -> (i32, i32) {
    %c0_i32 = arith.constant 0 : i32
    %c0_i32_0 = arith.constant 0 : i32
    return %arg0, %c0_i32 : i32, i32
  }
}

module attributes {stable_mosaic.version = 11 : i64} {
  func.func @_matmul_bias_kernel(%arg0: i32, %arg1: i32, %arg2: i32, %arg3: memref<128x128xbf16, #tpu.memory_space<vmem>>, %arg4: memref<128x128xbf16, #tpu.memory_space<vmem>>, %arg5: memref<1x128xf32, #tpu.memory_space<vmem>>, %arg6: memref<128x128xf32, #tpu.memory_space<vmem>>, %arg7: memref<128x128xf32, #tpu.memory_space<vmem>>) attributes {dimension_semantics = [#tpu.dimension_semantics<parallel>, #tpu.dimension_semantics<parallel>, #tpu.dimension_semantics<arbitrary>], iteration_bounds = array<i64: 1, 1, 1>, scalar_prefetch = 0 : i64, scratch_operands = 1 : i64, tpu.core_type = #tpu.core_type<tc>, window_params = [{transform_indices = @transform_0, window_bounds = array<i64: 128, 128>}, {transform_indices = @transform_1, window_bounds = array<i64: 128, 128>}, {transform_indices = @transform_2, window_bounds = array<i64: 1, 128>}, {transform_indices = @transform_3, window_bounds = array<i64: 128, 128>}]} {
    %c0_i32 = arith.constant 0 : i32
    %0 = arith.cmpi eq, %arg2, %c0_i32 : i32
    %1 = arith.extui %0 : i1 to i32
    %c0_i32_0 = arith.constant 0 : i32
    %2 = arith.cmpi ne, %1, %c0_i32_0 : i32
    scf.if %2 {
      %cst_10 = arith.constant 0.000000e+00 : f32
      %12 = vector.broadcast %cst_10 : f32 to vector<128x128xf32>
      %c0_11 = arith.constant 0 : index
      %c0_12 = arith.constant 0 : index
      %13 = vector.load %arg7[%c0_11, %c0_12] : memref<128x128xf32, #tpu.memory_space<vmem>>, vector<128x128xf32>
      tpu.vector_store %arg7[%c0_11, %c0_12], %12 {strides = array<i32>} : memref<128x128xf32, #tpu.memory_space<vmem>>, vector<128x128xf32>,
    } else {
    }
    %c0 = arith.constant 0 : index
    %c0_1 = arith.constant 0 : index
    %3 = vector.load %arg7[%c0, %c0_1] : memref<128x128xf32, #tpu.memory_space<vmem>>, vector<128x128xf32>
    %c0_2 = arith.constant 0 : index
    %c0_3 = arith.constant 0 : index
    %4 = vector.load %arg3[%c0_2, %c0_3] : memref<128x128xbf16, #tpu.memory_space<vmem>>, vector<128x128xbf16>
    %c0_4 = arith.constant 0 : index
    %c0_5 = arith.constant 0 : index
    %5 = vector.load %arg4[%c0_4, %c0_5] : memref<128x128xbf16, #tpu.memory_space<vmem>>, vector<128x128xbf16>
    %cst = arith.constant dense<0.000000e+00> : vector<128x128xf32>
    %6 = tpu.matmul %4, %5, %cst {dimension_numbers = #tpu.dot_dimension_numbers<[1], [0], [0], [1], [0, 0, 1, 1], [], []>} : vector<128x128xbf16>, vector<128x128xbf16>, vector<128x128xf32> -> vector<128x128xf32>
    %7 = arith.addf %3, %6 : vector<128x128xf32>
    %c0_6 = arith.constant 0 : index
    %c0_7 = arith.constant 0 : index
    %8 = vector.load %arg7[%c0_6, %c0_7] : memref<128x128xf32, #tpu.memory_space<vmem>>, vector<128x128xf32>
    tpu.vector_store %arg7[%c0_6, %c0_7], %7 {strides = array<i32>} : memref<128x128xf32, #tpu.memory_space<vmem>>, vector<128x128xf32>,
    %c0_i32_8 = arith.constant 0 : i32
    %9 = arith.cmpi eq, %arg2, %c0_i32_8 : i32
    %10 = arith.extui %9 : i1 to i32
    %c0_i32_9 = arith.constant 0 : i32
    %11 = arith.cmpi ne, %10, %c0_i32_9 : i32
    scf.if %11 {
      %c0_10 = arith.constant 0 : index
      %c0_11 = arith.constant 0 : index
      %12 = vector.load %arg7[%c0_10, %c0_11] : memref<128x128xf32, #tpu.memory_space<vmem>>, vector<128x128xf32>
      %c0_12 = arith.constant 0 : index
      %c0_13 = arith.constant 0 : index
      %13 = vector.load %arg5[%c0_12, %c0_13] : memref<1x128xf32, #tpu.memory_space<vmem>>, vector<1x128xf32>
      %14 = vector.broadcast %13 : vector<1x128xf32> to vector<128x128xf32>
      %15 = arith.addf %12, %14 : vector<128x128xf32>
      %c0_14 = arith.constant 0 : index
      %c0_15 = arith.constant 0 : index
      %16 = vector.load %arg6[%c0_14, %c0_15] : memref<128x128xf32, #tpu.memory_space<vmem>>, vector<128x128xf32>
      tpu.vector_store %arg6[%c0_14, %c0_15], %15 {strides = array<i32>} : memref<128x128xf32, #tpu.memory_space<vmem>>, vector<128x128xf32>,
    } else {
    }
    return
  }
  func.func @transform_0(%arg0: i32, %arg1: i32, %arg2: i32) -> (i32, i32) {
    %c0_i32 = arith.constant 0 : i32
    return %arg0, %arg2 : i32, i32
  }
  func.func @transform_1(%arg0: i32, %arg1: i32, %arg2: i32) -> (i32, i32) {
    %c0_i32 = arith.constant 0 : i32
    return %arg2, %arg1 : i32, i32
  }
  func.func @transform_2(%arg0: i32, %arg1: i32, %arg2: i32) -> (i32, i32) {
    %c0_i32 = arith.constant 0 : i32
    %c0_i32_0 = arith.constant 0 : i32
    return %c0_i32, %arg1 : i32, i32
  }
  func.func @transform_3(%arg0: i32, %arg1: i32, %arg2: i32) -> (i32, i32) {
    %c0_i32 = arith.constant 0 : i32
    return %arg0, %arg1 : i32, i32
  }
}

</mosaic_0001>

<bundles_post_ra>
// kernel: gru_language_model_forward.9
= control target key start
LH: loop header
LB: loop body
LE: loop exit
PB: predicated region body
PF: predicated region fallthrough
CT: control target
= control target key end

     0   :  { %s586_s1 = inlined_call_operand.vmem [shape: bf16[128,128], index: 1, kind: input, shape index: {}]   ;;  %s587_s0 = inlined_call_operand.vmem [shape: bf16[128,128], index: 0, kind: input, shape index: {}]   ;;  %s588_s2 = inlined_call_operand.vmem [shape: f32[1,128], index: 2, kind: input, shape index: {}]   ;;  %s589_s3 = inlined_call_operand.vmem [shape: f32[128,128], index: 3, kind: output, shape index: {}]  }
   0x1   :  { %v451_v0 = vld [vmem:[%s586_s1] sm:$0xff]   ;;  %v452_v1 = vld [vmem:[%s586_s1 + $0x8] sm:$0xff]   ;;  %v453_v2 = vld [vmem:[%s586_s1 + $0x10] sm:$0xff]  }
   0x2   :  { %403 = vmatprep.subr.bf16.mxu0 %v451_v0  ;;  %435 = vmatprep.subr.bf16.mxu1 %v451_v0  ;;  %v454_v3 = vld [vmem:[%s586_s1 + $0x18] sm:$0xff]   ;;  %v459_v4 = vld [vmem:[%s587_s0] sm:$0xff]   ;;  %v456_v7 = vld [vmem:[%s586_s1 + $0x28] sm:$0xff]  }
   0x3   :  { %404 = vmatpush3.bf16.msra.mxu0 %v451_v0  ;;  %443 = vmatpush3.bf16.msra.mxu1 %v451_v0  ;;  %v460_v5 = vld [vmem:[%s587_s0 + $0x20] sm:$0xff]   ;;  %v457_v8 = vld [vmem:[%s586_s1 + $0x30] sm:$0xff]   ;;  %v458_v9 = vld [vmem:[%s586_s1 + $0x38] sm:$0xff]  }
   0x4   :  { %405 = vmatprep.subr.bf16.mxu0 %v452_v1  ;;  %436 = vmatprep.subr.bf16.mxu1 %v452_v1  ;;  %v455_v6 = vld [vmem:[%s586_s1 + $0x20] sm:$0xff]   ;;  %v461_v10 = vld [vmem:[%s587_s0 + $0x8] sm:$0xff]   ;;  %v463_v12 = vld [vmem:[%s587_s0 + $0x10] sm:$0xff]  }
   0x5   :  { %419 = vmatprep.mubr.bf16.mxu0 %v459_v4  ;;  %427 = vmatprep.mubr.bf16.mxu1 %v460_v5  ;;  %v462_v11 = vld [vmem:[%s587_s0 + $0x28] sm:$0xff]   ;;  %v464_v13 = vld [vmem:[%s587_s0 + $0x30] sm:$0xff]   ;;  %v465_v14 = vld [vmem:[%s587_s0 + $0x18] sm:$0xff]  }
   0x6   :  { %v466_v15 = vld [vmem:[%s587_s0 + $0x38] sm:$0xff]   ;;  %v386_v16 = vld [vmem:[%s588_s2] ss:$0 sm:$0xff] }
   0x7   :  { %406 = vmatpush3.bf16.msra.mxu0 %v452_v1  ;;  %444 = vmatpush3.bf16.msra.mxu1 %v452_v1 }
   0x8   :  { %407 = vmatprep.subr.bf16.mxu0 %v453_v2  ;;  %437 = vmatprep.subr.bf16.mxu1 %v453_v2 }
   0xb   :  { %408 = vmatpush3.bf16.msra.mxu0 %v453_v2  ;;  %445 = vmatpush3.bf16.msra.mxu1 %v453_v2 }
   0xc   :  { %409 = vmatprep.subr.bf16.mxu0 %v454_v3  ;;  %438 = vmatprep.subr.bf16.mxu1 %v454_v3 }
   0xf   :  { %410 = vmatpush3.bf16.msra.mxu0 %v454_v3  ;;  %446 = vmatpush3.bf16.msra.mxu1 %v454_v3 }
  0x10   :  { %411 = vmatprep.subr.bf16.mxu0 %v455_v6  ;;  %439 = vmatprep.subr.bf16.mxu1 %v455_v6 }
  0x13   :  { %412 = vmatpush3.bf16.msra.mxu0 %v455_v6  ;;  %447 = vmatpush3.bf16.msra.mxu1 %v455_v6 }
  0x14   :  { %413 = vmatprep.subr.bf16.mxu0 %v456_v7  ;;  %440 = vmatprep.subr.bf16.mxu1 %v456_v7 }
  0x17   :  { %414 = vmatpush3.bf16.msra.mxu0 %v456_v7  ;;  %448 = vmatpush3.bf16.msra.mxu1 %v456_v7 }
  0x18   :  { %415 = vmatprep.subr.bf16.mxu0 %v457_v8  ;;  %441 = vmatprep.subr.bf16.mxu1 %v457_v8 }
  0x1b   :  { %416 = vmatpush3.bf16.msra.mxu0 %v457_v8  ;;  %449 = vmatpush3.bf16.msra.mxu1 %v457_v8 }
  0x1c   :  { %417 = vmatprep.subr.bf16.mxu0 %v458_v9  ;;  %442 = vmatprep.subr.bf16.mxu1 %v458_v9 }
  0x1f   :  { %418 = vmatpush3.bf16.msra.mxu0 %v458_v9  ;;  %450 = vmatpush3.bf16.msra.mxu1 %v458_v9 }
  0x22   :  { %420 = vmatmul.mubr.bf16.vlgmr.msra.gmra.mrb[0].mxu0 %v461_v10  ;;  %428 = vmatmul.mubr.bf16.vlgmr.msra.gmra.mrb[0].mxu1 %v462_v11 }
  0x23   :  { %423 = vmatprep.mubr.bf16.mxu0 %v463_v12  ;;  %431 = vmatprep.mubr.bf16.mxu1 %v464_v13 }
  0x2a   :  { %424 = vmatmul.mubr.bf16.gmra.mrb[4].mxu0 %v465_v14  ;;  %432 = vmatmul.mubr.bf16.gmra.mrb[4].mxu1 %v466_v15 }
  0xf5   :  { %v421_v17 = vpop.f32.mrb[0].mxu0  ;;  %v429_v18 = vpop.f32.mrb[0].mxu1 }
  0xf6   :  { %v336_v19 = vadd.f32 %v421_v17, %v386_v16  ;;  %v344_v20 = vadd.f32 %v429_v18, %v386_v16  ;;  %v213_v21 = vpop.f32.mrb[1].mxu0  ;;  %v245_v22 = vpop.f32.mrb[1].mxu1 }
  0xf7   :  { %v334_v23 = vadd.f32 %v386_v16, %v213_v21  ;;  %v342_v24 = vadd.f32 %v386_v16, %v245_v22  ;;  %v422_v25 = vpop.f32.mrb[2].mxu0  ;;  %v430_v26 = vpop.f32.mrb[2].mxu1 }
  0xf8   :  { %352 = vst [vmem:[%s589_s3 + $0x10] sm:$0xff] %v336_v19  ;;  %360 = vst [vmem:[%s589_s3 + $0x50] sm:$0xff] %v344_v20  ;;  %v337_v27 = vadd.f32 %v422_v25, %v386_v16  ;;  %v345_v28 = vadd.f32 %v430_v26, %v386_v16  ;;  %v216_v29 = vpop.f32.mrb[3].mxu0  ;;  %v248_v30 = vpop.f32.mrb[3].mxu1 }
  0xf9   :  { %350 = vst [vmem:[%s589_s3] sm:$0xff] %v334_v23  ;;  %358 = vst [vmem:[%s589_s3 + $0x40] sm:$0xff] %v342_v24  ;;  %v335_v31 = vadd.f32 %v386_v16, %v216_v29  ;;  %v343_v32 = vadd.f32 %v386_v16, %v248_v30 }
  0xfa   :  { %353 = vst [vmem:[%s589_s3 + $0x18] sm:$0xff] %v337_v27  ;;  %361 = vst [vmem:[%s589_s3 + $0x58] sm:$0xff] %v345_v28 }
  0xfb   :  { %351 = vst [vmem:[%s589_s3 + $0x8] sm:$0xff] %v335_v31  ;;  %359 = vst [vmem:[%s589_s3 + $0x48] sm:$0xff] %v343_v32 }
  0xfd   :  { %v425_v33 = vpop.f32.mrb[4].mxu0  ;;  %v433_v34 = vpop.f32.mrb[4].mxu1 }
  0xfe   :  { %v340_v35 = vadd.f32 %v425_v33, %v386_v16  ;;  %v348_v36 = vadd.f32 %v433_v34, %v386_v16  ;;  %v229_v37 = vpop.f32.mrb[5].mxu0  ;;  %v261_v38 = vpop.f32.mrb[5].mxu1 }
  0xff   :  { %v338_v39 = vadd.f32 %v386_v16, %v229_v37  ;;  %v346_v40 = vadd.f32 %v386_v16, %v261_v38  ;;  %v426_v41 = vpop.f32.mrb[6].mxu0  ;;  %v434_v42 = vpop.f32.mrb[6].mxu1 }
 0x100   :  { %356 = vst [vmem:[%s589_s3 + $0x30] sm:$0xff] %v340_v35  ;;  %364 = vst [vmem:[%s589_s3 + $0x70] sm:$0xff] %v348_v36  ;;  %v341_v43 = vadd.f32 %v426_v41, %v386_v16  ;;  %v349_v44 = vadd.f32 %v434_v42, %v386_v16  ;;  %v232_v45 = vpop.f32.mrb[7].mxu0  ;;  %v264_v46 = vpop.f32.mrb[7].mxu1 }
 0x101   :  { %354 = vst [vmem:[%s589_s3 + $0x20] sm:$0xff] %v338_v39  ;;  %362 = vst [vmem:[%s589_s3 + $0x60] sm:$0xff] %v346_v40  ;;  %v339_v47 = vadd.f32 %v386_v16, %v232_v45  ;;  %v347_v48 = vadd.f32 %v386_v16, %v264_v46 }
 0x102   :  { %357 = vst [vmem:[%s589_s3 + $0x38] sm:$0xff] %v341_v43  ;;  %365 = vst [vmem:[%s589_s3 + $0x78] sm:$0xff] %v349_v44 }
 0x103   :  { %355 = vst [vmem:[%s589_s3 + $0x28] sm:$0xff] %v339_v47  ;;  %363 = vst [vmem:[%s589_s3 + $0x68] sm:$0xff] %v347_v48 }

// kernel: gru_language_model_forward.5
= control target key start
LH: loop header
LB: loop body
LE: loop exit
PB: predicated region body
PF: predicated region fallthrough
CT: control target
= control target key end

     0   :  { %s1257_s12 = smov 0   ;;  %s1259_s13 = smov 0   ;;  %s1416_s0 = inlined_call_operand.vmem [shape: bf16[128,128], index: 0, kind: input, shape index: {}]   ;;  %s1417_s1 = inlined_call_operand.vmem [shape: bf16[128,384], index: 1, kind: input, shape index: {}]   ;;  %s1418_s2 = inlined_call_operand.vmem [shape: f32[1,384], index: 2, kind: input, shape index: {}]   ;;  %s1419_s3 = inlined_call_operand.vmem [shape: bf16[128,384], index: 3, kind: output, shape index: {}]  }
   0x1   :  { %s1261_s14 = smov 0   ;;  %s1263_s15 = smov 0  }
   0x2   :  { %s1265_s16 = smov 0  }
   0x3 LB: > { %s28_s17 = sadd.s32 1, %s1231_s15  ;;  %s967_s18 = sadd.s32 4294967295, %s1235_s16   ;;  %s1235_s16 = sphi %s1265_s16, %s13_s16   ;;  %s1231_s15 = sphi %s1263_s15, %s1424_s15   ;;  %s1227_s14 = sphi %s1261_s14, %s1423_s14   ;;  %s1223_s13 = sphi %s1259_s13, %s1422_s13   ;;  %s1219_s12 = sphi %s1257_s12, %s1421_s12  }
   0x4   : > { %p30_p0 = scmp.ge.s32.totalorder %s28_s17, 3  ;;  %p76_p1 = scmp.ne.s32.totalorder %s1223_s13, %s1219_s12 }
   0x5   : > { %p77_p2 = scmp.eq.s32.totalorder %s1235_s16, 0  ;;  %p134_p4 = scmp.eq.s32.totalorder %s967_s18, 2 }
   0x6   : > { %s1426_s17 = smov (%p30_p0, %s28_s17), 0  ;;  %s69_s20 = sadd.s32 1, %s1223_s13 }
   0x7   : > { %p78_p3 = por %p77_p2, %p76_p1  ;;  %s65_s19 = ssub.s32 %s1231_s15, %s1426_s17 }
   0x8   : > { %p67_p5 = scmp.eq.s32.totalorder %s65_s19, 0  ;;  %p1292_p6 = por %p134_p4, %p76_p1 }
   0x9   : > { %p971_p7 = scmp.ge.s32.totalorder %s1235_s16, 3 }
   0xa   : > { %s1297_s22 = scalar_select %p67_p5, %s1223_s13, %s69_s20  }
   0xb   : > { %168 = sbr.rel (%p971_p7) target bundleno = 32 (0x20), region = 20 }
  0x12   : > { %171 = sbr.rel (!%p78_p3) target bundleno = 32 (0x20), region = 24  ;;  %s173_s23 = sand.u32 (%p78_p3), 1, %s1223_s13  }
  0x13   : > { %s973_s24 = sshll.u32 (%p78_p3), %s1231_s15, 2  ;;  %s972_s25 = sshll.u32 (%p78_p3), %s173_s23, 6 }
  0x14   : > { %s1305_s28 = scalar_lea.vmem (%p78_p3), %s1417_s1, %s973_s24  ;;  %s175_s29 = scalar_lea.vmem (%p78_p3), [#allocation3], %s972_s25 }
  0x15   : > { %v196_v0 = vld [vmem:[%s1305_s28] sm:$0xf] (%p78_p3)  ;;  %v198_v1 = vld [vmem:[%s1305_s28 + $0xc] sm:$0xf] (%p78_p3)  ;;  %v200_v2 = vld [vmem:[%s1305_s28 + $0x18] sm:$0xf] (%p78_p3) }
  0x16   : > { %197 = vst [vmem:[%s175_s29] sm:$0xf] (%p78_p3), %v196_v0  ;;  %199 = vst [vmem:[%s175_s29 + $0x4] sm:$0xf] (%p78_p3), %v198_v1  ;;  %v202_v3 = vld [vmem:[%s1305_s28 + $0x24] sm:$0xf] (%p78_p3) }
  0x17   : > { %v204_v4 = vld [vmem:[%s1305_s28 + $0x30] sm:$0xf] (%p78_p3)  ;;  %201 = vst [vmem:[%s175_s29 + $0x8] sm:$0xf] (%p78_p3), %v200_v2  ;;  %203 = vst [vmem:[%s175_s29 + $0xc] sm:$0xf] (%p78_p3), %v202_v3 }
  0x18   : > { %205 = vst [vmem:[%s175_s29 + $0x10] sm:$0xf] (%p78_p3), %v204_v4  ;;  %v206_v5 = vld [vmem:[%s1305_s28 + $0x3c] sm:$0xf] (%p78_p3)  ;;  %v208_v6 = vld [vmem:[%s1305_s28 + $0x48] sm:$0xf] (%p78_p3) }
  0x19   : > { %v210_v7 = vld [vmem:[%s1305_s28 + $0x54] sm:$0xf]  ;;  %207 = vst [vmem:[%s175_s29 + $0x14] sm:$0xf] %v206_v5  ;;  %209 = vst [vmem:[%s175_s29 + $0x18] sm:$0xf] %v208_v6 }
  0x1a   : > { %211 = vst [vmem:[%s175_s29 + $0x1c] sm:$0xf] %v210_v7  ;;  %v212_v8 = vld [vmem:[%s1305_s28 + $0x60] sm:$0xf]  ;;  %v214_v9 = vld [vmem:[%s1305_s28 + $0x6c] sm:$0xf] }
  0x1b   : > { %v216_v10 = vld [vmem:[%s1305_s28 + $0x78] sm:$0xf]  ;;  %213 = vst [vmem:[%s175_s29 + $0x20] sm:$0xf] %v212_v8  ;;  %215 = vst [vmem:[%s175_s29 + $0x24] sm:$0xf] %v214_v9 }
  0x1c   : > { %217 = vst [vmem:[%s175_s29 + $0x28] sm:$0xf] %v216_v10  ;;  %v218_v11 = vld [vmem:[%s1305_s28 + $0x84] sm:$0xf]  ;;  %v220_v12 = vld [vmem:[%s1305_s28 + $0x90] sm:$0xf] }
  0x1d   : > { %v222_v13 = vld [vmem:[%s1305_s28 + $0x9c] sm:$0xf]  ;;  %219 = vst [vmem:[%s175_s29 + $0x2c] sm:$0xf] %v218_v11  ;;  %221 = vst [vmem:[%s175_s29 + $0x30] sm:$0xf] %v220_v12 }
  0x1e   : > { %223 = vst [vmem:[%s175_s29 + $0x34] sm:$0xf] %v222_v13  ;;  %v224_v14 = vld [vmem:[%s1305_s28 + $0xa8] sm:$0xf]  ;;  %v226_v15 = vld [vmem:[%s1305_s28 + $0xb4] sm:$0xf] }
  0x1f   : > { %225 = vst [vmem:[%s175_s29 + $0x38] sm:$0xf] %v224_v14  ;;  %227 = vst [vmem:[%s175_s29 + $0x3c] sm:$0xf] %v226_v15 }
  0x20 PF: > { %p974_p8 = scmp.ge.s32.totalorder %s1235_s16, 1  ;;  %p287_p9 = scmp.lt.s32.totalorder %s1235_s16, 4 }
  0x22   : > { %p288_p10 = pnand %p974_p8, %p287_p9 }
  0x23   : > { %s294_s30 = sand.u32 (!%p288_p10), 1, %s1219_s12   ;;  %v1189_v16 = vld [vmem:[%s1416_s0] sm:$0xff] (!%p288_p10)   ;;  %v1191_v26 = vld [vmem:[%s1416_s0 + $0x8] sm:$0xff] (!%p288_p10)   ;;  %v1193_v28 = vld [vmem:[%s1416_s0 + $0x10] sm:$0xff] (!%p288_p10)   ;;  %p337_p11 = scmp.lt.s32.totalorder (!%p288_p10), %s1227_s14, 2 }
  0x24   : > { %291 = sbr.rel (%p288_p10) target bundleno = 310 (0x136), region = 69  ;;  %s1329_s6 = sshll.u32 (!%p288_p10), %s294_s30, 6  ;;  %v1190_v17 = vld [vmem:[%s1416_s0 + $0x20] sm:$0xff] (!%p288_p10)   ;;  %1109 = vmatprep.mubr.bf16.mxu0 (!%p288_p10), %v1189_v16  ;;  %v1192_v27 = vld [vmem:[%s1416_s0 + $0x28] sm:$0xff] (!%p288_p10)   ;;  %v1194_v29 = vld [vmem:[%s1416_s0 + $0x30] sm:$0xff] (!%p288_p10)  }
  0x25   : > { %s1335_s9 = scalar_lea.vmem (!%p288_p10), [#allocation3], %s1329_s6  ;;  %1117 = vmatprep.mubr.bf16.mxu1 (!%p288_p10), %v1190_v17  ;;  %v1195_v30 = vld [vmem:[%s1416_s0 + $0x18] sm:$0xff] (!%p288_p10)   ;;  %s1369_s7 = scalar_lea.vmem (!%p288_p10), [#allocation4], %s1329_s6 }
  0x26   : > { %v1181_v18 = vld [vmem:[%s1335_s9] sm:$0xff] (!%p288_p10)   ;;  %v1182_v19 = vld [vmem:[%s1335_s9 + $0x8] sm:$0xff] (!%p288_p10)   ;;  %v1183_v20 = vld [vmem:[%s1335_s9 + $0x10] sm:$0xff] (!%p288_p10)  }
  0x27   : > { %1093 = vmatprep.subr.bf16.mxu0 (!%p288_p10), %v1181_v18  ;;  %1125 = vmatprep.subr.bf16.mxu1 (!%p288_p10), %v1181_v18  ;;  %v1184_v21 = vld [vmem:[%s1335_s9 + $0x18] sm:$0xff] (!%p288_p10)   ;;  %v1185_v22 = vld [vmem:[%s1335_s9 + $0x20] sm:$0xff] (!%p288_p10)   ;;  %v1186_v23 = vld [vmem:[%s1335_s9 + $0x28] sm:$0xff] (!%p288_p10)  }
  0x28   : > { %1094 = vmatpush3.bf16.msra.mxu0 (!%p288_p10), %v1181_v18  ;;  %1133 = vmatpush3.bf16.msra.mxu1 (!%p288_p10), %v1181_v18  ;;  %v1187_v24 = vld [vmem:[%s1335_s9 + $0x30] sm:$0xff] (!%p288_p10)   ;;  %v1188_v25 = vld [vmem:[%s1335_s9 + $0x38] sm:$0xff] (!%p288_p10)  }
  0x29   : > { %1095 = vmatprep.subr.bf16.mxu0 (!%p288_p10), %v1182_v19  ;;  %1126 = vmatprep.subr.bf16.mxu1 (!%p288_p10), %v1182_v19  ;;  %v1196_v31 = vld [vmem:[%s1416_s0 + $0x38] sm:$0xff] (!%p288_p10)  }
  0x2b   : > { %s338_s29 = scalar_select %p337_p11, %s1227_s14, 2 }
  0x2c   : > { %1096 = vmatpush3.bf16.msra.mxu0 %v1182_v19  ;;  %1134 = vmatpush3.bf16.msra.mxu1 %v1182_v19  ;;  %s1011_s6 = sshll.u32 (%p1292_p6), %s1227_s14, 2 }
  0x2d   : > { %1097 = vmatprep.subr.bf16.mxu0 %v1183_v20  ;;  %1127 = vmatprep.subr.bf16.mxu1 %v1183_v20  ;;  %s339_s5 = scalar_lea.vmem %s1418_s2, %s338_s29  ;;  %s768_s10 = scalar_lea.vmem (%p1292_p6), %s1419_s3, %s1011_s6 }
  0x2e   : > { %v993_v33 = vld [vmem:[%s339_s5] ss:$0 sm:$0xff] }
  0x30   : > { %1098 = vmatpush3.bf16.msra.mxu0 %v1183_v20  ;;  %1135 = vmatpush3.bf16.msra.mxu1 %v1183_v20 }
  0x31   : > { %1099 = vmatprep.subr.bf16.mxu0 %v1184_v21  ;;  %1128 = vmatprep.subr.bf16.mxu1 %v1184_v21 }
  0x34   : > { %1100 = vmatpush3.bf16.msra.mxu0 %v1184_v21  ;;  %1136 = vmatpush3.bf16.msra.mxu1 %v1184_v21 }
  0x35   : > { %1101 = vmatprep.subr.bf16.mxu0 %v1185_v22  ;;  %1129 = vmatprep.subr.bf16.mxu1 %v1185_v22 }
  0x38   : > { %1102 = vmatpush3.bf16.msra.mxu0 %v1185_v22  ;;  %1137 = vmatpush3.bf16.msra.mxu1 %v1185_v22 }
  0x39   : > { %1103 = vmatprep.subr.bf16.mxu0 %v1186_v23  ;;  %1130 = vmatprep.subr.bf16.mxu1 %v1186_v23 }
  0x3c   : > { %1104 = vmatpush3.bf16.msra.mxu0 %v1186_v23  ;;  %1138 = vmatpush3.bf16.msra.mxu1 %v1186_v23 }
  0x3d   : > { %1105 = vmatprep.subr.bf16.mxu0 %v1187_v24  ;;  %1131 = vmatprep.subr.bf16.mxu1 %v1187_v24 }
  0x40   : > { %1106 = vmatpush3.bf16.msra.mxu0 %v1187_v24  ;;  %1139 = vmatpush3.bf16.msra.mxu1 %v1187_v24 }
  0x41   : > { %1107 = vmatprep.subr.bf16.mxu0 %v1188_v25  ;;  %1132 = vmatprep.subr.bf16.mxu1 %v1188_v25 }
  0x44   : > { %1108 = vmatpush3.bf16.msra.mxu0 %v1188_v25  ;;  %1140 = vmatpush3.bf16.msra.mxu1 %v1188_v25 }
  0x47   : > { %1110 = vmatmul.mubr.bf16.vlgmr.msra.gmra.mrb[0].mxu0 %v1191_v26  ;;  %1118 = vmatmul.mubr.bf16.vlgmr.msra.gmra.mrb[0].mxu1 %v1192_v27 }
  0x48   : > { %1113 = vmatprep.mubr.bf16.mxu0 %v1193_v28  ;;  %1121 = vmatprep.mubr.bf16.mxu1 %v1194_v29 }
  0x4f   : > { %1114 = vmatmul.mubr.bf16.gmra.mrb[4].mxu0 %v1195_v30  ;;  %1122 = vmatmul.mubr.bf16.gmra.mrb[4].mxu1 %v1196_v31 }
 0x11a   : > { %v1111_v32 = vpop.f32.mrb[0].mxu0  ;;  %v1119_v34 = vpop.f32.mrb[0].mxu1 }
 0x11b   : > { %v540_v35 = vpop.f32.mrb[1].mxu0  ;;  %v572_v36 = vpop.f32.mrb[1].mxu1  ;;  %v663_v39 = vadd.f32 %v1111_v32, %v993_v33  ;;  %v671_v40 = vadd.f32 %v1119_v34, %v993_v33 }
 0x11c   : > { %v1112_v37 = vpop.f32.mrb[2].mxu0  ;;  %v1120_v38 = vpop.f32.mrb[2].mxu1  ;;  %v661_v45 = vadd.f32 %v993_v33, %v540_v35  ;;  %v669_v46 = vadd.f32 %v993_v33, %v572_v36 }
 0x11d   : > { %v664_v41 = vadd.f32 %v1112_v37, %v993_v33  ;;  %v672_v42 = vadd.f32 %v1120_v38, %v993_v33  ;;  %v543_v43 = vpop.f32.mrb[3].mxu0  ;;  %v575_v44 = vpop.f32.mrb[3].mxu1 }
 0x11e   : > { %v662_v47 = vadd.f32 %v993_v33, %v543_v43  ;;  %v670_v48 = vadd.f32 %v993_v33, %v575_v44 }
 0x11f   : > { %v1038_v49 = vpack.c.bf16 %v664_v41, %v663_v39  ;;  %v1058_v50 = vpack.c.bf16 %v672_v42, %v671_v40 }
 0x120   : > { %v1033_v51 = vpack.c.bf16 %v662_v47, %v661_v45  ;;  %v1053_v52 = vpack.c.bf16 %v670_v48, %v669_v46 }
 0x121   : > { %1070 = vst [vmem:[%s1369_s7 + $0x8] sm:$0xff] %v1038_v49   ;;  %1074 = vst [vmem:[%s1369_s7 + $0x28] sm:$0xff] %v1058_v50  }
 0x122   : > { %1034 = vst [vmem:[%s1369_s7] sm:$0xff] %v1033_v51   ;;  %1073 = vst [vmem:[%s1369_s7 + $0x20] sm:$0xff] %v1053_v52   ;;  %v1115_v53 = vpop.f32.mrb[4].mxu0  ;;  %v1123_v54 = vpop.f32.mrb[4].mxu1 }
 0x123   : > { %v556_v55 = vpop.f32.mrb[5].mxu0  ;;  %v588_v56 = vpop.f32.mrb[5].mxu1  ;;  %v667_v59 = vadd.f32 %v1115_v53, %v993_v33  ;;  %v675_v60 = vadd.f32 %v1123_v54, %v993_v33 }
 0x124   : > { %v1116_v57 = vpop.f32.mrb[6].mxu0  ;;  %v1124_v58 = vpop.f32.mrb[6].mxu1  ;;  %v665_v1 = vadd.f32 %v993_v33, %v556_v55  ;;  %v673_v2 = vadd.f32 %v993_v33, %v588_v56  ;;  %763 = sbr.rel (!%p1292_p6) target bundleno = 310 (0x136), region = 85 }
 0x125   : > { %v668_v61 = vadd.f32 %v1116_v57, %v993_v33  ;;  %v676_v62 = vadd.f32 %v1124_v58, %v993_v33  ;;  %v559_v63 = vpop.f32.mrb[7].mxu0  ;;  %v591_v0 = vpop.f32.mrb[7].mxu1 }
 0x126   : > { %v666_v3 = vadd.f32 %v993_v33, %v559_v63  ;;  %v674_v4 = vadd.f32 %v993_v33, %v591_v0 }
 0x127   : > { %v1048_v5 = vpack.c.bf16 %v668_v61, %v667_v59  ;;  %v1068_v6 = vpack.c.bf16 %v676_v62, %v675_v60 }
 0x128   : > { %v1043_v7 = vpack.c.bf16 %v666_v3, %v665_v1  ;;  %v1063_v8 = vpack.c.bf16 %v674_v4, %v673_v2  ;;  %v788_v11 = vld [vmem:[%s1369_s7 + $0x8] sm:$0xf] (%p1292_p6)  ;;  %v790_v12 = vld [vmem:[%s1369_s7 + $0xc] sm:$0xf] (%p1292_p6) }
 0x129   : > { %1072 = vst [vmem:[%s1369_s7 + $0x18] sm:$0xff] %v1048_v5   ;;  %1076 = vst [vmem:[%s1369_s7 + $0x38] sm:$0xff] %v1068_v6   ;;  %v784_v9 = vld [vmem:[%s1369_s7] sm:$0xf] (%p1292_p6)  ;;  %v786_v10 = vld [vmem:[%s1369_s7 + $0x4] sm:$0xf] (%p1292_p6) }
 0x12a   : > { %1071 = vst [vmem:[%s1369_s7 + $0x10] sm:$0xff] %v1043_v7   ;;  %1075 = vst [vmem:[%s1369_s7 + $0x30] sm:$0xff] %v1063_v8   ;;  %v800_v17 = vld [vmem:[%s1369_s7 + $0x20] sm:$0xf] (%p1292_p6)  ;;  %v802_v18 = vld [vmem:[%s1369_s7 + $0x24] sm:$0xf] (%p1292_p6) }
 0x12b   : > { %785 = vst [vmem:[%s768_s10] sm:$0xf] %v784_v9  ;;  %787 = vst [vmem:[%s768_s10 + $0xc] sm:$0xf] %v786_v10  ;;  %v804_v19 = vld [vmem:[%s1369_s7 + $0x28] sm:$0xf] }
 0x12c   : > { %789 = vst [vmem:[%s768_s10 + $0x18] sm:$0xf] %v788_v11  ;;  %791 = vst [vmem:[%s768_s10 + $0x24] sm:$0xf] %v790_v12  ;;  %v806_v20 = vld [vmem:[%s1369_s7 + $0x2c] sm:$0xf] }
 0x12d   : > { %801 = vst [vmem:[%s768_s10 + $0x60] sm:$0xf] %v800_v17  ;;  %803 = vst [vmem:[%s768_s10 + $0x6c] sm:$0xf] %v802_v18 }
 0x12e   : > { %805 = vst [vmem:[%s768_s10 + $0x78] sm:$0xf] %v804_v19  ;;  %807 = vst [vmem:[%s768_s10 + $0x84] sm:$0xf] %v806_v20 }
 0x130   : > { %v796_v15 = vld [vmem:[%s1369_s7 + $0x18] sm:$0xf]  ;;  %v798_v16 = vld [vmem:[%s1369_s7 + $0x1c] sm:$0xf] }
 0x131   : > { %v792_v13 = vld [vmem:[%s1369_s7 + $0x10] sm:$0xf]  ;;  %v794_v14 = vld [vmem:[%s1369_s7 + $0x14] sm:$0xf]  ;;  %797 = vst [vmem:[%s768_s10 + $0x48] sm:$0xf] %v796_v15 }
 0x132   : > { %793 = vst [vmem:[%s768_s10 + $0x30] sm:$0xf] %v792_v13  ;;  %795 = vst [vmem:[%s768_s10 + $0x3c] sm:$0xf] %v794_v14  ;;  %v808_v21 = vld [vmem:[%s1369_s7 + $0x30] sm:$0xf] }
 0x133   : > { %799 = vst [vmem:[%s768_s10 + $0x54] sm:$0xf] %v798_v16  ;;  %v810_v22 = vld [vmem:[%s1369_s7 + $0x34] sm:$0xf]  ;;  %809 = vst [vmem:[%s768_s10 + $0x90] sm:$0xf] %v808_v21 }
 0x134   : > { %811 = vst [vmem:[%s768_s10 + $0x9c] sm:$0xf] %v810_v22  ;;  %v812_v23 = vld [vmem:[%s1369_s7 + $0x38] sm:$0xf]  ;;  %v814_v24 = vld [vmem:[%s1369_s7 + $0x3c] sm:$0xf] }
 0x135   : > { %813 = vst [vmem:[%s768_s10 + $0xa8] sm:$0xf] %v812_v23  ;;  %815 = vst [vmem:[%s768_s10 + $0xb4] sm:$0xf] %v814_v24 }
 0x136 PF: > { %s13_s16 = sadd.s32 1, %s1235_s16   ;;  %s1421_s12 = smov %s1223_s13 }
 0x137   : > { %p10_p12 = scmp.ge.s32.totalorder %s13_s16, 5   ;;  %s1422_s13 = smov %s1297_s22 }
 0x138   : > { %s1423_s14 = smov %s1231_s15  ;;  %s1424_s15 = smov %s1426_s17 }
 0x139   :  { %12 = sbr.rel (!%p10_p12) target bundleno = 3 (0x3), region = 163 }

// kernel: gru_language_model_forward.6
= control target key start
LH: loop header
LB: loop body
LE: loop exit
PB: predicated region body
PF: predicated region fallthrough
CT: control target
= control target key end

     0   :  { %v2041_v1 = vmov 0.0   ;;  %v2042_v2 = vmov 0   ;;  %vm2043_vm0 = vmmov 0   ;;  %s2795_s1 = inlined_call_operand.vmem [shape: bf16[128,384], index: 1, kind: input, shape index: {}]   ;;  %s2796_s3 = inlined_call_operand.vmem [shape: f32[16,128], index: 3, kind: input, shape index: {}]   ;;  %s2797_s0 = inlined_call_operand.vmem [shape: bf16[8,16,384], index: 0, kind: input, shape index: {}]   ;;  %s2798_s2 = inlined_call_operand.vmem [shape: f32[1,128], index: 2, kind: input, shape index: {}]   ;;  %s2799_s4 = inlined_call_operand.vmem [shape: bf16[8,16,128], index: 4, kind: output, shape index: {0}]   ;;  %s2800_s5 = inlined_call_operand.vmem [shape: f32[16,128], index: 5, kind: output, shape index: {1}]  }
   0x1   :  { %v2077_v0 = vld [vmem:[%s2795_s1 + $0x4] ss:$12 sps:$4 sm:$0xff]   ;;  %1661 = vmatprep.subr.bf16.mxu1 %v2041_v1  ;;  %240 = vmatprep.mubr.bf16.mxu0 %v2042_v2  ;;  %v2084_v3 = vld [vmem:[%s2795_s1] ss:$12 sps:$4 sm:$0xff]   ;;  %v2092_v4 = vld [vmem:[%s2795_s1 + $0x1c] ss:$12 sps:$4 sm:$0xff]  }
   0x2   :  { %1677 = vmatprep.mubr.msk.bf16.mxu1 %vm2043_vm0, %v2041_v1  ;;  %208 = vmatprep.subr.bf16.mxu0 %v2077_v0  ;;  %v2098_v5 = vld [vmem:[%s2795_s1 + $0x18] ss:$12 sps:$4 sm:$0xff]   ;;  %v2104_v6 = vld [vmem:[%s2795_s1 + $0x34] ss:$12 sps:$4 sm:$0xff]   ;;  %v2110_v7 = vld [vmem:[%s2795_s1 + $0x30] ss:$12 sps:$4 sm:$0xff]  }
   0x3   :  { %209 = vmatpush1.bf16.msra.mxu0 %v2084_v3  ;;  %v2116_v8 = vld [vmem:[%s2795_s1 + $0x4c] ss:$12 sps:$4 sm:$0xff]   ;;  %v2121_v9 = vld [vmem:[%s2795_s1 + $0x8] ss:$12 sps:$4 sm:$0xff]   ;;  %v2134_v11 = vld [vmem:[%s2795_s1 + $0x64] ss:$12 sps:$4 sm:$0xff]  }
   0x4   :  { %210 = vmatprep.subr.bf16.mxu0 %v2092_v4  ;;  %v2127_v10 = vld [vmem:[%s2795_s1 + $0x48] ss:$12 sps:$4 sm:$0xff]   ;;  %1662 = vmatpush3.bf16.msra.mxu1 %v2121_v9  ;;  %v2140_v12 = vld [vmem:[%s2795_s1 + $0x20] ss:$12 sps:$4 sm:$0xff]   ;;  %v2152_v14 = vld [vmem:[%s2795_s1 + $0x38] ss:$12 sps:$4 sm:$0xff]  }
   0x5   :  { %1663 = vmatprep.subr.bf16.mxu1 %v2041_v1  ;;  %v2145_v13 = vld [vmem:[%s2795_s1 + $0x60] ss:$12 sps:$4 sm:$0xff]   ;;  %v2158_v15 = vld [vmem:[%s2795_s1 + $0x7c] ss:$12 sps:$4 sm:$0xff]   ;;  %v2165_v16 = vld [vmem:[%s2795_s1 + $0x78] ss:$12 sps:$4 sm:$0xff]  }
   0x6   :  { %v2171_v17 = vld [vmem:[%s2795_s1 + $0x50] ss:$12 sps:$4 sm:$0xff]   ;;  %v2177_v18 = vld [vmem:[%s2795_s1 + $0x94] ss:$12 sps:$4 sm:$0xff]   ;;  %v2196_v21 = vld [vmem:[%s2795_s1 + $0xac] ss:$12 sps:$4 sm:$0xff]  }
   0x7   :  { %211 = vmatpush1.bf16.msra.mxu0 %v2098_v5  ;;  %v2184_v19 = vld [vmem:[%s2795_s1 + $0x90] ss:$12 sps:$4 sm:$0xff]   ;;  %v2190_v20 = vld [vmem:[%s2795_s1 + $0x68] ss:$12 sps:$4 sm:$0xff]   ;;  %v2208_v23 = vld [vmem:[%s2796_s3] sm:$0xff] }
   0x8   :  { %212 = vmatprep.subr.bf16.mxu0 %v2104_v6  ;;  %1664 = vmatpush3.bf16.msra.mxu1 %v2140_v12  ;;  %v2202_v22 = vld [vmem:[%s2795_s1 + $0xa8] ss:$12 sps:$4 sm:$0xff]   ;;  %v2219_v25 = vld [vmem:[%s2795_s1 + $0x80] ss:$12 sps:$4 sm:$0xff]   ;;  %v2230_v27 = vld [vmem:[%s2795_s1 + $0x98] ss:$12 sps:$4 sm:$0xff]  }
   0x9   :  { %1665 = vmatprep.subr.bf16.mxu1 %v2041_v1  ;;  %v2213_v24 = vld [vmem:[%s2796_s3 + $0x8] sm:$0xff]  ;;  %v2238_v28 = vld [vmem:[%s2795_s1 + $0xb0] ss:$12 sps:$4 sm:$0xff]   ;;  %v69_v29 = vld [vmem:[%s2797_s0] sm:$0xff] }
   0xa   :  { %v79_v26 = vpack.c.bf16 %v2213_v24, %v2208_v23  ;;  %v71_v30 = vld [vmem:[%s2797_s0 + $0xc] sm:$0xff]  ;;  %v73_v31 = vunpack.c.l.bf16 %v69_v29  ;;  %v74_v34 = vunpack.c.h.bf16 %v69_v29  ;;  %v2287_v56 = vld [vmem:[%s2798_s2] ss:$0 sm:$0xff]  ;;  %v70_v58 = vld [vmem:[%s2797_s0 + $0x8] ss:$12 sps:$4 sm:$0xff]  }
   0xb   :  { %213 = vmatpush1.bf16.msra.mxu0 %v2110_v7  ;;  %v76_v32 = vunpack.c.l.bf16 %v71_v30  ;;  %v77_v38 = vunpack.c.h.bf16 %v71_v30  ;;  %v75_v62 = vunpack.c.l.bf16 %v70_v58  ;;  %v78_v29 = vunpack.c.h.bf16 %v70_v58 }
   0xc   :  { %214 = vmatprep.subr.bf16.mxu0 %v2116_v8  ;;  %1666 = vmatpush3.bf16.msra.mxu1 %v2152_v14 }
   0xd   :  { %1667 = vmatprep.subr.bf16.mxu1 %v2041_v1 }
   0xf   :  { %215 = vmatpush1.bf16.msra.mxu0 %v2127_v10 }
  0x10   :  { %216 = vmatprep.subr.bf16.mxu0 %v2134_v11  ;;  %1668 = vmatpush3.bf16.msra.mxu1 %v2171_v17 }
  0x11   :  { %1669 = vmatprep.subr.bf16.mxu1 %v2041_v1 }
  0x13   :  { %217 = vmatpush1.bf16.msra.mxu0 %v2145_v13 }
  0x14   :  { %218 = vmatprep.subr.bf16.mxu0 %v2158_v15  ;;  %1670 = vmatpush3.bf16.msra.mxu1 %v2190_v20 }
  0x15   :  { %1671 = vmatprep.subr.bf16.mxu1 %v2041_v1 }
  0x17   :  { %219 = vmatpush1.bf16.msra.mxu0 %v2165_v16 }
  0x18   :  { %220 = vmatprep.subr.bf16.mxu0 %v2177_v18  ;;  %1672 = vmatpush3.bf16.msra.mxu1 %v2219_v25 }
  0x19   :  { %1673 = vmatprep.subr.bf16.mxu1 %v2041_v1 }
  0x1b   :  { %221 = vmatpush1.bf16.msra.mxu0 %v2184_v19 }
  0x1c   :  { %222 = vmatprep.subr.bf16.mxu0 %v2196_v21  ;;  %1674 = vmatpush3.bf16.msra.mxu1 %v2230_v27 }
  0x1d   :  { %1675 = vmatprep.subr.bf16.mxu1 %v2041_v1 }
  0x1f   :  { %223 = vmatpush1.bf16.msra.mxu0 %v2202_v22 }
  0x20   :  { %357 = vmatprep.subr.bf16.mxu0 %v2077_v0  ;;  %1676 = vmatpush3.bf16.msra.mxu1 %v2238_v28 }
  0x21   :  { %1681 = vmatprep.subr.bf16.mxu1 %v2041_v1 }
  0x22   :  { %241 = vmatmul.mubr.bf16.vlgmr.msra.gmra.mrb[0].mxu0 %v79_v26 }
  0x23   :  { %358 = vmatpush1.bf16.msra.mxu0 %v2084_v3  ;;  %389 = vmatprep.mubr.bf16.mxu0 %v2042_v2 }
  0x24   :  { %359 = vmatprep.subr.bf16.mxu0 %v2092_v4  ;;  %1678 = vmatmul.mubr.bf16.vlgmr.msra.gmra.mrb[0].mxu1 %v79_v26 }
  0x25   :  { %1682 = vmatpush3.bf16.msra.mxu1 %v2121_v9  ;;  %1697 = vmatprep.mubr.msk.bf16.mxu1 %vm2043_vm0, %v2041_v1 }
  0x26   :  { %1683 = vmatprep.subr.bf16.mxu1 %v2041_v1 }
  0x27   :  { %360 = vmatpush1.bf16.msra.mxu0 %v2098_v5 }
  0x28   :  { %361 = vmatprep.subr.bf16.mxu0 %v2104_v6 }
  0x29   :  { %1684 = vmatpush3.bf16.msra.mxu1 %v2140_v12 }
  0x2a   :  { %1685 = vmatprep.subr.bf16.mxu1 %v2041_v1 }
  0x2b   :  { %362 = vmatpush1.bf16.msra.mxu0 %v2110_v7 }
  0x2c   :  { %363 = vmatprep.subr.bf16.mxu0 %v2116_v8 }
  0x2d   :  { %1686 = vmatpush3.bf16.msra.mxu1 %v2152_v14 }
  0x2e   :  { %1687 = vmatprep.subr.bf16.mxu1 %v2041_v1 }
  0x2f   :  { %364 = vmatpush1.bf16.msra.mxu0 %v2127_v10 }
  0x30   :  { %365 = vmatprep.subr.bf16.mxu0 %v2134_v11 }
  0x31   :  { %1688 = vmatpush3.bf16.msra.mxu1 %v2171_v17 }
  0x32   :  { %1689 = vmatprep.subr.bf16.mxu1 %v2041_v1 }
  0x33   :  { %366 = vmatpush1.bf16.msra.mxu0 %v2145_v13 }
  0x34   :  { %367 = vmatprep.subr.bf16.mxu0 %v2158_v15 }
  0x35   :  { %1690 = vmatpush3.bf16.msra.mxu1 %v2190_v20 }
  0x36   :  { %1691 = vmatprep.subr.bf16.mxu1 %v2041_v1 }
  0x37   :  { %368 = vmatpush1.bf16.msra.mxu0 %v2165_v16 }
  0x38   :  { %369 = vmatprep.subr.bf16.mxu0 %v2177_v18 }
  0x39   :  { %1692 = vmatpush3.bf16.msra.mxu1 %v2219_v25 }
  0x3a   :  { %1693 = vmatprep.subr.bf16.mxu1 %v2041_v1 }
  0x3b   :  { %370 = vmatpush1.bf16.msra.mxu0 %v2184_v19 }
  0x3c   :  { %371 = vmatprep.subr.bf16.mxu0 %v2196_v21 }
  0x3d   :  { %1694 = vmatpush3.bf16.msra.mxu1 %v2230_v27 }
  0x3e   :  { %1695 = vmatprep.subr.bf16.mxu1 %v2041_v1 }
  0x3f   :  { %372 = vmatpush1.bf16.msra.mxu0 %v2202_v22 }
  0x40   :  { %507 = vmatprep.subr.bf16.mxu0 %v2077_v0 }
  0x41   :  { %1696 = vmatpush3.bf16.msra.mxu1 %v2238_v28 }
  0x42   :  { %1701 = vmatprep.subr.bf16.mxu1 %v2041_v1 }
  0xf5   :  { %v242_v33 = vpop.f32.mrb[0].mxu0 }
  0xf6   :  { %v292_v35 = vadd.f32 %v242_v33, %v73_v31  ;;  %v244_v36 = vpop.f32.mrb[1].mxu0 }
  0xf7   :  { %v246_v37 = vpop.f32.mrb[2].mxu0  ;;  %v306_v42 = vadd.f32 %v244_v36, %v74_v34  ;;  %v285_v46 = vpop.f32.mrb[0].mxu1 }
  0xf8   :  { %v1436_v39 = vmul.f32 -1.442695, %v292_v35  ;;  %v293_v40 = vadd.f32 %v246_v37, %v76_v32  ;;  %v248_v41 = vpop.f32.mrb[3].mxu0  ;;  %v1679_v47 = vpop.f32.mrb[1].mxu1  ;;  %v320_v60 = vadd.f32 %v2287_v56, %v285_v46 }
  0xf9   :  { %v307_v44 = vadd.f32 %v248_v41, %v77_v38  ;;  %v1438_v45 = vmul.f32 -1.442695, %v306_v42  ;;  %v288_v49 = vpop.f32.mrb[2].mxu1 }
  0xfa   :  { %1856 = vpow2.f32 %v1436_v39  ;;  %v1437_v43 = vmul.f32 -1.442695, %v293_v40  ;;  %v1680_v50 = vpop.f32.mrb[3].mxu1  ;;  %v321_v30 = vadd.f32 %v2287_v56, %v288_v49 }
  0xfb   :  { %v1439_v48 = vmul.f32 -1.442695, %v307_v44 }
  0xfc   :  { %1858 = vpow2.f32 %v1437_v43 }
  0xfd   :  { %1860 = vpow2.f32 %v1438_v45 }
  0xfe   :  { %1862 = vpow2.f32 %v1439_v48 }
 0x104   :  { %v1857_v51 = vpop.eup %1856 }
 0x105   :  { %v300_v52 = vadd.f32 1.0, %v1857_v51 }
 0x106   :  { %v1859_v53 = vpop.eup %1858 }
 0x107   :  { %1864 = vrcp.f32 %v300_v52  ;;  %v301_v54 = vadd.f32 1.0, %v1859_v53  ;;  %v1861_v55 = vpop.eup %1860 }
 0x108   :  { %v1863_v57 = vpop.eup %1862  ;;  %v314_v59 = vadd.f32 1.0, %v1861_v55 }
 0x109   :  { %1866 = vrcp.f32 %v301_v54  ;;  %v315_v61 = vadd.f32 1.0, %v1863_v57 }
 0x10a   :  { %1868 = vrcp.f32 %v314_v59 }
 0x10b   :  { %1870 = vrcp.f32 %v315_v61 }
 0x111   :  { %v1865_v63 = vpop.eup %1864 }
 0x112   :  { %v322_v26 = vmul.f32 %v1865_v63, %v320_v60 }
 0x113   :  { %v1867_v31 = vpop.eup %1866 }
 0x114   :  { %v324_v32 = vadd.f32 %v322_v26, %v75_v62  ;;  %v323_v33 = vmul.f32 %v1867_v31, %v321_v30  ;;  %v1869_v35 = vpop.eup %1868 }
 0x115   :  { %v1871_v36 = vpop.eup %1870  ;;  %v328_v37 = vsub.f32 1.0, %v1869_v35  ;;  %v332_v41 = vmul.f32 %v1869_v35, %v2208_v23  ;;  %v1442_v23 = vld [vmem:[%s2797_s0 + $0x18] sm:$0xff] }
 0x116   :  { %1872 = vtanh.f32 %v324_v32  ;;  %v325_v34 = vadd.f32 %v323_v33, %v78_v29  ;;  %v329_v39 = vsub.f32 1.0, %v1871_v36  ;;  %v333_v44 = vmul.f32 %v1871_v36, %v2213_v24  ;;  %v1444_v24 = vld [vmem:[%s2797_s0 + $0x24] sm:$0xff] }
 0x117   :  { %v351_v48 = vunpack.c.l.bf16 %v1442_v23  ;;  %v354_v49 = vunpack.c.l.bf16 %v1444_v24  ;;  %v352_v52 = vunpack.c.h.bf16 %v1442_v23  ;;  %v355_v59 = vunpack.c.h.bf16 %v1444_v24 }
 0x118   :  { %1874 = vtanh.f32 %v325_v34 }
 0x120   :  { %v1873_v38 = vpop.eup %1872 }
 0x121   :  { %v330_v40 = vmul.f32 %v1873_v38, %v328_v37 }
 0x122   :  { %v1875_v42 = vpop.eup %1874 }
 0x123   :  { %v331_v43 = vmul.f32 %v1875_v42, %v329_v39  ;;  %v2296_v45 = vadd.f32 %v332_v41, %v330_v40  ;;  %v1443_v39 = vld [vmem:[%s2797_s0 + $0x20] ss:$12 sps:$4 sm:$0xff]  }
 0x124   :  { %v353_v41 = vunpack.c.l.bf16 %v1443_v39  ;;  %v356_v23 = vunpack.c.h.bf16 %v1443_v39 }
 0x125   :  { %v2298_v46 = vadd.f32 %v333_v44, %v331_v43 }
 0x127   :  { %v336_v47 = vpack.c.bf16 %v2298_v46, %v2296_v45 }
 0x129   :  { %1546 = vst [vmem:[%s2799_s4] sm:$0xff] %v336_v47   ;;  %390 = vmatmul.mubr.bf16.vlgmr.msra.gmra.mrb[4].mxu0 %v336_v47  ;;  %1698 = vmatmul.mubr.bf16.vlgmr.msra.gmra.mrb[4].mxu1 %v336_v47 }
 0x12a   :  { %508 = vmatpush1.bf16.msra.mxu0 %v2084_v3  ;;  %1702 = vmatpush3.bf16.msra.mxu1 %v2121_v9 }
 0x12b   :  { %509 = vmatprep.subr.bf16.mxu0 %v2092_v4  ;;  %1703 = vmatprep.subr.bf16.mxu1 %v2041_v1 }
 0x12c   :  { %539 = vmatprep.mubr.bf16.mxu0 %v2042_v2  ;;  %1717 = vmatprep.mubr.msk.bf16.mxu1 %vm2043_vm0, %v2041_v1 }
 0x12e   :  { %510 = vmatpush1.bf16.msra.mxu0 %v2098_v5  ;;  %1704 = vmatpush3.bf16.msra.mxu1 %v2140_v12 }
 0x12f   :  { %511 = vmatprep.subr.bf16.mxu0 %v2104_v6  ;;  %1705 = vmatprep.subr.bf16.mxu1 %v2041_v1 }
 0x132   :  { %512 = vmatpush1.bf16.msra.mxu0 %v2110_v7  ;;  %1706 = vmatpush3.bf16.msra.mxu1 %v2152_v14 }
 0x133   :  { %513 = vmatprep.subr.bf16.mxu0 %v2116_v8  ;;  %1707 = vmatprep.subr.bf16.mxu1 %v2041_v1 }
 0x136   :  { %514 = vmatpush1.bf16.msra.mxu0 %v2127_v10  ;;  %1708 = vmatpush3.bf16.msra.mxu1 %v2171_v17 }
 0x137   :  { %515 = vmatprep.subr.bf16.mxu0 %v2134_v11  ;;  %1709 = vmatprep.subr.bf16.mxu1 %v2041_v1 }
 0x13a   :  { %516 = vmatpush1.bf16.msra.mxu0 %v2145_v13  ;;  %1710 = vmatpush3.bf16.msra.mxu1 %v2190_v20 }
 0x13b   :  { %517 = vmatprep.subr.bf16.mxu0 %v2158_v15  ;;  %1711 = vmatprep.subr.bf16.mxu1 %v2041_v1 }
 0x13e   :  { %518 = vmatpush1.bf16.msra.mxu0 %v2165_v16  ;;  %1712 = vmatpush3.bf16.msra.mxu1 %v2219_v25 }
 0x13f   :  { %519 = vmatprep.subr.bf16.mxu0 %v2177_v18  ;;  %1713 = vmatprep.subr.bf16.mxu1 %v2041_v1 }
 0x142   :  { %520 = vmatpush1.bf16.msra.mxu0 %v2184_v19  ;;  %1714 = vmatpush3.bf16.msra.mxu1 %v2230_v27 }
 0x143   :  { %521 = vmatprep.subr.bf16.mxu0 %v2196_v21  ;;  %1715 = vmatprep.subr.bf16.mxu1 %v2041_v1 }
 0x146   :  { %522 = vmatpush1.bf16.msra.mxu0 %v2202_v22  ;;  %1716 = vmatpush3.bf16.msra.mxu1 %v2238_v28 }
 0x147   :  { %657 = vmatprep.subr.bf16.mxu0 %v2077_v0  ;;  %1721 = vmatprep.subr.bf16.mxu1 %v2041_v1 }
 0x1fc   :  { %v391_v50 = vpop.f32.mrb[4].mxu0  ;;  %v434_v51 = vpop.f32.mrb[4].mxu1 }
 0x1fd   :  { %v441_v53 = vadd.f32 %v391_v50, %v351_v48  ;;  %v393_v54 = vpop.f32.mrb[5].mxu0  ;;  %v1699_v55 = vpop.f32.mrb[5].mxu1  ;;  %v469_v42 = vadd.f32 %v2287_v56, %v434_v51 }
 0x1fe   :  { %v395_v57 = vpop.f32.mrb[6].mxu0  ;;  %v437_v58 = vpop.f32.mrb[6].mxu1  ;;  %v455_v26 = vadd.f32 %v393_v54, %v352_v52 }
 0x1ff   :  { %v1446_v60 = vmul.f32 -1.442695, %v441_v53  ;;  %v442_v61 = vadd.f32 %v395_v57, %v354_v49  ;;  %v397_v62 = vpop.f32.mrb[7].mxu0  ;;  %v1700_v63 = vpop.f32.mrb[7].mxu1  ;;  %v470_v24 = vadd.f32 %v2287_v56, %v437_v58 }
 0x200   :  { %v456_v30 = vadd.f32 %v397_v62, %v355_v59  ;;  %v1448_v31 = vmul.f32 -1.442695, %v455_v26 }
 0x201   :  { %1876 = vpow2.f32 %v1446_v60  ;;  %v1447_v29 = vmul.f32 -1.442695, %v442_v61 }
 0x202   :  { %v1449_v32 = vmul.f32 -1.442695, %v456_v30 }
 0x203   :  { %1878 = vpow2.f32 %v1447_v29 }
 0x204   :  { %1880 = vpow2.f32 %v1448_v31 }
 0x205   :  { %1882 = vpow2.f32 %v1449_v32 }
 0x20b   :  { %v1877_v33 = vpop.eup %1876 }
 0x20c   :  { %v449_v34 = vadd.f32 1.0, %v1877_v33 }
 0x20d   :  { %v1879_v35 = vpop.eup %1878 }
 0x20e   :  { %1884 = vrcp.f32 %v449_v34  ;;  %v450_v36 = vadd.f32 1.0, %v1879_v35  ;;  %v1881_v37 = vpop.eup %1880 }
 0x20f   :  { %v1883_v38 = vpop.eup %1882  ;;  %v463_v40 = vadd.f32 1.0, %v1881_v37 }
 0x210   :  { %1886 = vrcp.f32 %v450_v36  ;;  %v464_v43 = vadd.f32 1.0, %v1883_v38 }
 0x211   :  { %1888 = vrcp.f32 %v463_v40 }
 0x212   :  { %1890 = vrcp.f32 %v464_v43 }
 0x218   :  { %v1885_v44 = vpop.eup %1884 }
 0x219   :  { %v471_v47 = vmul.f32 %v1885_v44, %v469_v42 }
 0x21a   :  { %v1887_v48 = vpop.eup %1886 }
 0x21b   :  { %v473_v49 = vadd.f32 %v471_v47, %v353_v41  ;;  %v472_v50 = vmul.f32 %v1887_v48, %v470_v24  ;;  %v1889_v53 = vpop.eup %1888 }
 0x21c   :  { %v1891_v54 = vpop.eup %1890  ;;  %v477_v55 = vsub.f32 1.0, %v1889_v53  ;;  %v481_v60 = vmul.f32 %v1889_v53, %v2296_v45  ;;  %v1454_v45 = vld [vmem:[%s2797_s0 + $0x30] sm:$0xff] }
 0x21d   :  { %1892 = vtanh.f32 %v473_v49  ;;  %v474_v52 = vadd.f32 %v472_v50, %v356_v23  ;;  %v478_v59 = vsub.f32 1.0, %v1891_v54  ;;  %v482_v63 = vmul.f32 %v1891_v54, %v2298_v46  ;;  %v1456_v46 = vld [vmem:[%s2797_s0 + $0x3c] sm:$0xff] }
 0x21e   :  { %v501_v30 = vunpack.c.l.bf16 %v1454_v45  ;;  %v504_v31 = vunpack.c.l.bf16 %v1456_v46  ;;  %v502_v34 = vunpack.c.h.bf16 %v1454_v45  ;;  %v505_v40 = vunpack.c.h.bf16 %v1456_v46 }
 0x21f   :  { %1894 = vtanh.f32 %v474_v52 }
 0x227   :  { %v1893_v57 = vpop.eup %1892 }
 0x228   :  { %v479_v51 = vmul.f32 %v1893_v57, %v477_v55 }
 0x229   :  { %v1895_v61 = vpop.eup %1894 }
 0x22a   :  { %v480_v62 = vmul.f32 %v1895_v61, %v478_v59  ;;  %v2353_v58 = vadd.f32 %v481_v60, %v479_v51  ;;  %v1455_v59 = vld [vmem:[%s2797_s0 + $0x38] ss:$12 sps:$4 sm:$0xff]  }
 0x22b   :  { %v503_v60 = vunpack.c.l.bf16 %v1455_v59  ;;  %v506_v45 = vunpack.c.h.bf16 %v1455_v59 }
 0x22c   :  { %v2355_v26 = vadd.f32 %v482_v63, %v480_v62 }
 0x22e   :  { %v485_v29 = vpack.c.bf16 %v2355_v26, %v2353_v58 }
 0x230   :  { %1582 = vst [vmem:[%s2799_s4 + $0x8] sm:$0xff] %v485_v29   ;;  %540 = vmatmul.mubr.bf16.vlgmr.msra.gmra.mrb[8].mxu0 %v485_v29  ;;  %1718 = vmatmul.mubr.bf16.vlgmr.msra.gmra.mrb[8].mxu1 %v485_v29 }
 0x231   :  { %658 = vmatpush1.bf16.msra.mxu0 %v2084_v3  ;;  %1722 = vmatpush3.bf16.msra.mxu1 %v2121_v9 }
 0x232   :  { %659 = vmatprep.subr.bf16.mxu0 %v2092_v4  ;;  %1723 = vmatprep.subr.bf16.mxu1 %v2041_v1 }
 0x233   :  { %689 = vmatprep.mubr.bf16.mxu0 %v2042_v2  ;;  %1737 = vmatprep.mubr.msk.bf16.mxu1 %vm2043_vm0, %v2041_v1 }
 0x235   :  { %660 = vmatpush1.bf16.msra.mxu0 %v2098_v5  ;;  %1724 = vmatpush3.bf16.msra.mxu1 %v2140_v12 }
 0x236   :  { %661 = vmatprep.subr.bf16.mxu0 %v2104_v6  ;;  %1725 = vmatprep.subr.bf16.mxu1 %v2041_v1 }
 0x239   :  { %662 = vmatpush1.bf16.msra.mxu0 %v2110_v7  ;;  %1726 = vmatpush3.bf16.msra.mxu1 %v2152_v14 }
 0x23a   :  { %663 = vmatprep.subr.bf16.mxu0 %v2116_v8  ;;  %1727 = vmatprep.subr.bf16.mxu1 %v2041_v1 }
 0x23d   :  { %664 = vmatpush1.bf16.msra.mxu0 %v2127_v10  ;;  %1728 = vmatpush3.bf16.msra.mxu1 %v2171_v17 }
 0x23e   :  { %665 = vmatprep.subr.bf16.mxu0 %v2134_v11  ;;  %1729 = vmatprep.subr.bf16.mxu1 %v2041_v1 }
 0x241   :  { %666 = vmatpush1.bf16.msra.mxu0 %v2145_v13  ;;  %1730 = vmatpush3.bf16.msra.mxu1 %v2190_v20 }
 0x242   :  { %667 = vmatprep.subr.bf16.mxu0 %v2158_v15  ;;  %1731 = vmatprep.subr.bf16.mxu1 %v2041_v1 }
 0x245   :  { %668 = vmatpush1.bf16.msra.mxu0 %v2165_v16  ;;  %1732 = vmatpush3.bf16.msra.mxu1 %v2219_v25 }
 0x246   :  { %669 = vmatprep.subr.bf16.mxu0 %v2177_v18  ;;  %1733 = vmatprep.subr.bf16.mxu1 %v2041_v1 }
 0x249   :  { %670 = vmatpush1.bf16.msra.mxu0 %v2184_v19  ;;  %1734 = vmatpush3.bf16.msra.mxu1 %v2230_v27 }
 0x24a   :  { %671 = vmatprep.subr.bf16.mxu0 %v2196_v21  ;;  %1735 = vmatprep.subr.bf16.mxu1 %v2041_v1 }
 0x24d   :  { %672 = vmatpush1.bf16.msra.mxu0 %v2202_v22  ;;  %1736 = vmatpush3.bf16.msra.mxu1 %v2238_v28 }
 0x24e   :  { %807 = vmatprep.subr.bf16.mxu0 %v2077_v0  ;;  %1741 = vmatprep.subr.bf16.mxu1 %v2041_v1 }
 0x303   :  { %v541_v32 = vpop.f32.mrb[8].mxu0  ;;  %v584_v33 = vpop.f32.mrb[8].mxu1 }
 0x304   :  { %v591_v35 = vadd.f32 %v541_v32, %v501_v30  ;;  %v543_v36 = vpop.f32.mrb[9].mxu0  ;;  %v1719_v37 = vpop.f32.mrb[9].mxu1  ;;  %v619_v61 = vadd.f32 %v2287_v56, %v584_v33 }
 0x305   :  { %v545_v38 = vpop.f32.mrb[10].mxu0  ;;  %v587_v39 = vpop.f32.mrb[10].mxu1  ;;  %v605_v47 = vadd.f32 %v543_v36, %v502_v34 }
 0x306   :  { %v1458_v41 = vmul.f32 -1.442695, %v591_v35  ;;  %v592_v42 = vadd.f32 %v545_v38, %v504_v31  ;;  %v547_v43 = vpop.f32.mrb[11].mxu0  ;;  %v1720_v44 = vpop.f32.mrb[11].mxu1  ;;  %v620_v46 = vadd.f32 %v2287_v56, %v587_v39 }
 0x307   :  { %v606_v24 = vadd.f32 %v547_v43, %v505_v40  ;;  %v1460_v48 = vmul.f32 -1.442695, %v605_v47 }
 0x308   :  { %1896 = vpow2.f32 %v1458_v41  ;;  %v1459_v23 = vmul.f32 -1.442695, %v592_v42 }
 0x309   :  { %v1461_v49 = vmul.f32 -1.442695, %v606_v24 }
 0x30a   :  { %1898 = vpow2.f32 %v1459_v23 }
 0x30b   :  { %1900 = vpow2.f32 %v1460_v48 }
 0x30c   :  { %1902 = vpow2.f32 %v1461_v49 }
 0x312   :  { %v1897_v50 = vpop.eup %1896 }
 0x313   :  { %v599_v52 = vadd.f32 1.0, %v1897_v50 }
 0x314   :  { %v1899_v53 = vpop.eup %1898 }
 0x315   :  { %1904 = vrcp.f32 %v599_v52  ;;  %v600_v54 = vadd.f32 1.0, %v1899_v53  ;;  %v1901_v55 = vpop.eup %1900 }
 0x316   :  { %v1903_v57 = vpop.eup %1902  ;;  %v613_v51 = vadd.f32 1.0, %v1901_v55 }
 0x317   :  { %1906 = vrcp.f32 %v600_v54  ;;  %v614_v62 = vadd.f32 1.0, %v1903_v57 }
 0x318   :  { %1908 = vrcp.f32 %v613_v51 }
 0x319   :  { %1910 = vrcp.f32 %v614_v62 }
 0x31f   :  { %v1905_v63 = vpop.eup %1904 }
 0x320   :  { %v621_v29 = vmul.f32 %v1905_v63, %v619_v61 }
 0x321   :  { %v1907_v30 = vpop.eup %1906 }
 0x322   :  { %v623_v31 = vadd.f32 %v621_v29, %v503_v60  ;;  %v622_v32 = vmul.f32 %v1907_v30, %v620_v46  ;;  %v1909_v35 = vpop.eup %1908 }
 0x323   :  { %v1911_v36 = vpop.eup %1910  ;;  %v627_v37 = vsub.f32 1.0, %v1909_v35  ;;  %v631_v41 = vmul.f32 %v1909_v35, %v2353_v58  ;;  %v1466_v58 = vld [vmem:[%s2797_s0 + $0x48] sm:$0xff] }
 0x324   :  { %1912 = vtanh.f32 %v623_v31  ;;  %v624_v34 = vadd.f32 %v622_v32, %v506_v45  ;;  %v628_v40 = vsub.f32 1.0, %v1911_v36  ;;  %v632_v44 = vmul.f32 %v1911_v36, %v2355_v26  ;;  %v1468_v26 = vld [vmem:[%s2797_s0 + $0x54] sm:$0xff] }
 0x325   :  { %v651_v24 = vunpack.c.l.bf16 %v1466_v58  ;;  %v654_v48 = vunpack.c.l.bf16 %v1468_v26  ;;  %v652_v52 = vunpack.c.h.bf16 %v1466_v58  ;;  %v655_v59 = vunpack.c.h.bf16 %v1468_v26 }
 0x326   :  { %1914 = vtanh.f32 %v624_v34 }
 0x32e   :  { %v1913_v38 = vpop.eup %1912 }
 0x32f   :  { %v629_v33 = vmul.f32 %v1913_v38, %v627_v37  ;;  %v1467_v38 = vld [vmem:[%s2797_s0 + $0x50] ss:$12 sps:$4 sm:$0xff]  }
 0x330   :  { %v1915_v42 = vpop.eup %1914 }
 0x331   :  { %v630_v43 = vmul.f32 %v1915_v42, %v628_v40  ;;  %v2410_v39 = vadd.f32 %v631_v41, %v629_v33  ;;  %v653_v33 = vunpack.c.l.bf16 %v1467_v38 }
 0x333   :  { %v2412_v47 = vadd.f32 %v632_v44, %v630_v43 }
 0x335   :  { %v635_v23 = vpack.c.bf16 %v2412_v47, %v2410_v39 }
 0x337   :  { %1583 = vst [vmem:[%s2799_s4 + $0x10] sm:$0xff] %v635_v23   ;;  %690 = vmatmul.mubr.bf16.vlgmr.msra.gmra.mrb[12].mxu0 %v635_v23  ;;  %1738 = vmatmul.mubr.bf16.vlgmr.msra.gmra.mrb[12].mxu1 %v635_v23  ;;  %v656_v23 = vunpack.c.h.bf16 %v1467_v38 }
 0x338   :  { %808 = vmatpush1.bf16.msra.mxu0 %v2084_v3  ;;  %1742 = vmatpush3.bf16.msra.mxu1 %v2121_v9 }
 0x339   :  { %809 = vmatprep.subr.bf16.mxu0 %v2092_v4  ;;  %1743 = vmatprep.subr.bf16.mxu1 %v2041_v1 }
 0x33a   :  { %839 = vmatprep.mubr.bf16.mxu0 %v2042_v2  ;;  %1757 = vmatprep.mubr.msk.bf16.mxu1 %vm2043_vm0, %v2041_v1 }
 0x33c   :  { %810 = vmatpush1.bf16.msra.mxu0 %v2098_v5  ;;  %1744 = vmatpush3.bf16.msra.mxu1 %v2140_v12 }
 0x33d   :  { %811 = vmatprep.subr.bf16.mxu0 %v2104_v6  ;;  %1745 = vmatprep.subr.bf16.mxu1 %v2041_v1 }
 0x340   :  { %812 = vmatpush1.bf16.msra.mxu0 %v2110_v7  ;;  %1746 = vmatpush3.bf16.msra.mxu1 %v2152_v14 }
 0x341   :  { %813 = vmatprep.subr.bf16.mxu0 %v2116_v8  ;;  %1747 = vmatprep.subr.bf16.mxu1 %v2041_v1 }
 0x344   :  { %814 = vmatpush1.bf16.msra.mxu0 %v2127_v10  ;;  %1748 = vmatpush3.bf16.msra.mxu1 %v2171_v17 }
 0x345   :  { %815 = vmatprep.subr.bf16.mxu0 %v2134_v11  ;;  %1749 = vmatprep.subr.bf16.mxu1 %v2041_v1 }
 0x348   :  { %816 = vmatpush1.bf16.msra.mxu0 %v2145_v13  ;;  %1750 = vmatpush3.bf16.msra.mxu1 %v2190_v20 }
 0x349   :  { %817 = vmatprep.subr.bf16.mxu0 %v2158_v15  ;;  %1751 = vmatprep.subr.bf16.mxu1 %v2041_v1 }
 0x34c   :  { %818 = vmatpush1.bf16.msra.mxu0 %v2165_v16  ;;  %1752 = vmatpush3.bf16.msra.mxu1 %v2219_v25 }
 0x34d   :  { %819 = vmatprep.subr.bf16.mxu0 %v2177_v18  ;;  %1753 = vmatprep.subr.bf16.mxu1 %v2041_v1 }
 0x350   :  { %820 = vmatpush1.bf16.msra.mxu0 %v2184_v19  ;;  %1754 = vmatpush3.bf16.msra.mxu1 %v2230_v27 }
 0x351   :  { %821 = vmatprep.subr.bf16.mxu0 %v2196_v21  ;;  %1755 = vmatprep.subr.bf16.mxu1 %v2041_v1 }
 0x354   :  { %822 = vmatpush1.bf16.msra.mxu0 %v2202_v22  ;;  %1756 = vmatpush3.bf16.msra.mxu1 %v2238_v28 }
 0x355   :  { %957 = vmatprep.subr.bf16.mxu0 %v2077_v0  ;;  %1761 = vmatprep.subr.bf16.mxu1 %v2041_v1 }
 0x40a   :  { %v691_v49 = vpop.f32.mrb[12].mxu0  ;;  %v734_v50 = vpop.f32.mrb[12].mxu1 }
 0x40b   :  { %v741_v53 = vadd.f32 %v691_v49, %v651_v24  ;;  %v693_v54 = vpop.f32.mrb[13].mxu0  ;;  %v1739_v55 = vpop.f32.mrb[13].mxu1  ;;  %v769_v41 = vadd.f32 %v2287_v56, %v734_v50 }
 0x40c   :  { %v695_v57 = vpop.f32.mrb[14].mxu0  ;;  %v737_v0 = vpop.f32.mrb[14].mxu1  ;;  %v755_v63 = vadd.f32 %v693_v54, %v652_v52 }
 0x40d   :  { %v1470_v51 = vmul.f32 -1.442695, %v741_v53  ;;  %v742_v60 = vadd.f32 %v695_v57, %v654_v48  ;;  %v697_v61 = vpop.f32.mrb[15].mxu0  ;;  %v1740_v62 = vpop.f32.mrb[15].mxu1  ;;  %v770_v58 = vadd.f32 %v2287_v56, %v737_v0 }
 0x40e   :  { %v756_v45 = vadd.f32 %v697_v61, %v655_v59  ;;  %v1472_v46 = vmul.f32 -1.442695, %v755_v63 }
 0x40f   :  { %1916 = vpow2.f32 %v1470_v51  ;;  %v1471_v29 = vmul.f32 -1.442695, %v742_v60 }
 0x410   :  { %v1473_v30 = vmul.f32 -1.442695, %v756_v45 }
 0x411   :  { %1918 = vpow2.f32 %v1471_v29 }
 0x412   :  { %1920 = vpow2.f32 %v1472_v46 }
 0x413   :  { %1922 = vpow2.f32 %v1473_v30 }
 0x419   :  { %v1917_v31 = vpop.eup %1916 }
 0x41a   :  { %v749_v32 = vadd.f32 1.0, %v1917_v31  ;;  %v1479_v31 = vld [vmem:[%s2797_s0 + $0x68] ss:$12 sps:$4 sm:$0xff]  }
 0x41b   :  { %v1919_v34 = vpop.eup %1918 }
 0x41c   :  { %1924 = vrcp.f32 %v749_v32  ;;  %v750_v35 = vadd.f32 1.0, %v1919_v34  ;;  %v1921_v36 = vpop.eup %1920  ;;  %v803_v34 = vunpack.c.l.bf16 %v1479_v31 }
 0x41d   :  { %v1923_v37 = vpop.eup %1922  ;;  %v763_v40 = vadd.f32 1.0, %v1921_v36 }
 0x41e   :  { %1926 = vrcp.f32 %v750_v35  ;;  %v764_v42 = vadd.f32 1.0, %v1923_v37 }
 0x41f   :  { %1928 = vrcp.f32 %v763_v40  ;;  %v806_v40 = vunpack.c.h.bf16 %v1479_v31 }
 0x420   :  { %1930 = vrcp.f32 %v764_v42 }
 0x426   :  { %v1925_v43 = vpop.eup %1924 }
 0x427   :  { %v771_v44 = vmul.f32 %v1925_v43, %v769_v41 }
 0x428   :  { %v1927_v26 = vpop.eup %1926 }
 0x429   :  { %v773_v24 = vadd.f32 %v771_v44, %v653_v33  ;;  %v772_v48 = vmul.f32 %v1927_v26, %v770_v58  ;;  %v1929_v52 = vpop.eup %1928 }
 0x42a   :  { %v1931_v53 = vpop.eup %1930  ;;  %v777_v54 = vsub.f32 1.0, %v1929_v52  ;;  %v781_v59 = vmul.f32 %v1929_v52, %v2410_v39 }
 0x42b   :  { %1932 = vtanh.f32 %v773_v24  ;;  %v774_v49 = vadd.f32 %v772_v48, %v656_v23  ;;  %v778_v57 = vsub.f32 1.0, %v1931_v53  ;;  %v782_v61 = vmul.f32 %v1931_v53, %v2412_v47 }
 0x42d   :  { %1934 = vtanh.f32 %v774_v49 }
 0x435   :  { %v1933_v55 = vpop.eup %1932 }
 0x436   :  { %v779_v50 = vmul.f32 %v1933_v55, %v777_v54 }
 0x437   :  { %v1935_v51 = vpop.eup %1934 }
 0x438   :  { %v780_v60 = vmul.f32 %v1935_v51, %v778_v57  ;;  %v2467_v0 = vadd.f32 %v781_v59, %v779_v50  ;;  %v2541_v51 = vld [vmem:[%s2795_s1] ss:$12 sps:$4 sm:$0xff]  }
 0x43a   :  { %v2469_v62 = vadd.f32 %v782_v61, %v780_v60  ;;  %v2547_v60 = vld [vmem:[%s2795_s1 + $0x8] ss:$12 sps:$4 sm:$0xff]  }
 0x43b   :  { %v2553_v61 = vld [vmem:[%s2795_s1 + $0x1c] ss:$12 sps:$4 sm:$0xff]  }
 0x43c   :  { %v785_v63 = vpack.c.bf16 %v2469_v62, %v2467_v0 }
 0x43e   :  { %1584 = vst [vmem:[%s2799_s4 + $0x18] sm:$0xff] %v785_v63   ;;  %840 = vmatmul.mubr.bf16.vlgmr.msra.gmra.mrb[16].mxu0 %v785_v63  ;;  %1758 = vmatmul.mubr.bf16.vlgmr.msra.gmra.mrb[16].mxu1 %v785_v63  ;;  %v2575_v63 = vld [vmem:[%s2795_s1 + $0x34] ss:$12 sps:$4 sm:$0xff]  }
 0x43f   :  { %958 = vmatpush1.bf16.msra.mxu0 %v2084_v3  ;;  %1762 = vmatpush3.bf16.msra.mxu1 %v2121_v9  ;;  %v2512_v3 = vld [vmem:[%s2795_s1 + $0x4] ss:$12 sps:$4 sm:$0xff]  }
 0x440   :  { %959 = vmatprep.subr.bf16.mxu0 %v2092_v4  ;;  %1763 = vmatprep.subr.bf16.mxu1 %v2041_v1  ;;  %v1478_v4 = vld [vmem:[%s2797_s0 + $0x60] sm:$0xff] }
 0x441   :  { %989 = vmatprep.mubr.bf16.mxu0 %v2042_v2  ;;  %1777 = vmatprep.mubr.msk.bf16.mxu1 %vm2043_vm0, %v2041_v1 }
 0x443   :  { %960 = vmatpush1.bf16.msra.mxu0 %v2098_v5  ;;  %1764 = vmatpush3.bf16.msra.mxu1 %v2140_v12  ;;  %v1480_v5 = vld [vmem:[%s2797_s0 + $0x6c] sm:$0xff] }
 0x444   :  { %961 = vmatprep.subr.bf16.mxu0 %v2104_v6  ;;  %1765 = vmatprep.subr.bf16.mxu1 %v2041_v1  ;;  %v801_v6 = vunpack.c.l.bf16 %v1478_v4 }
 0x447   :  { %962 = vmatpush1.bf16.msra.mxu0 %v2110_v7  ;;  %1766 = vmatpush3.bf16.msra.mxu1 %v2152_v14  ;;  %v804_v7 = vunpack.c.l.bf16 %v1480_v5 }
 0x448   :  { %963 = vmatprep.subr.bf16.mxu0 %v2116_v8  ;;  %1767 = vmatprep.subr.bf16.mxu1 %v2041_v1 }
 0x44b   :  { %964 = vmatpush1.bf16.msra.mxu0 %v2127_v10  ;;  %1768 = vmatpush3.bf16.msra.mxu1 %v2171_v17  ;;  %v802_v10 = vunpack.c.h.bf16 %v1478_v4  ;;  %v2582_v4 = vld [vmem:[%s2795_s1 + $0x30] ss:$12 sps:$4 sm:$0xff]  }
 0x44c   :  { %965 = vmatprep.subr.bf16.mxu0 %v2134_v11  ;;  %1769 = vmatprep.subr.bf16.mxu1 %v2041_v1 }
 0x44f   :  { %966 = vmatpush1.bf16.msra.mxu0 %v2145_v13  ;;  %1770 = vmatpush3.bf16.msra.mxu1 %v2190_v20 }
 0x450   :  { %967 = vmatprep.subr.bf16.mxu0 %v2158_v15  ;;  %1771 = vmatprep.subr.bf16.mxu1 %v2041_v1 }
 0x453   :  { %968 = vmatpush1.bf16.msra.mxu0 %v2165_v16  ;;  %1772 = vmatpush3.bf16.msra.mxu1 %v2219_v25  ;;  %v805_v16 = vunpack.c.h.bf16 %v1480_v5  ;;  %v2588_v5 = vld [vmem:[%s2795_s1 + $0x38] ss:$12 sps:$4 sm:$0xff]  }
 0x454   :  { %969 = vmatprep.subr.bf16.mxu0 %v2177_v18  ;;  %1773 = vmatprep.subr.bf16.mxu1 %v2041_v1 }
 0x457   :  { %970 = vmatpush1.bf16.msra.mxu0 %v2184_v19  ;;  %1774 = vmatpush3.bf16.msra.mxu1 %v2230_v27 }
 0x458   :  { %971 = vmatprep.subr.bf16.mxu0 %v2196_v21  ;;  %1775 = vmatprep.subr.bf16.mxu1 %v2041_v1 }
 0x45b   :  { %972 = vmatpush1.bf16.msra.mxu0 %v2202_v22  ;;  %1776 = vmatpush3.bf16.msra.mxu1 %v2238_v28 }
 0x45c   :  { %1107 = vmatprep.subr.bf16.mxu0 %v2512_v3  ;;  %1781 = vmatprep.subr.bf16.mxu1 %v2041_v1 }
 0x511   :  { %v841_v8 = vpop.f32.mrb[16].mxu0  ;;  %v884_v9 = vpop.f32.mrb[16].mxu1 }
 0x512   :  { %v891_v11 = vadd.f32 %v841_v8, %v801_v6  ;;  %v843_v12 = vpop.f32.mrb[17].mxu0  ;;  %v1759_v13 = vpop.f32.mrb[17].mxu1  ;;  %v919_v35 = vadd.f32 %v2287_v56, %v884_v9  ;;  %v2594_v6 = vld [vmem:[%s2795_s1 + $0x4c] ss:$12 sps:$4 sm:$0xff]   ;;  %v2607_v8 = vld [vmem:[%s2795_s1 + $0x50] ss:$12 sps:$4 sm:$0xff]  }
 0x513   :  { %v845_v14 = vpop.f32.mrb[18].mxu0  ;;  %v887_v15 = vpop.f32.mrb[18].mxu1  ;;  %v905_v21 = vadd.f32 %v843_v12, %v802_v10  ;;  %v2613_v9 = vld [vmem:[%s2795_s1 + $0x64] ss:$12 sps:$4 sm:$0xff]   ;;  %v2620_v10 = vld [vmem:[%s2795_s1 + $0x60] ss:$12 sps:$4 sm:$0xff]  }
 0x514   :  { %v1482_v17 = vmul.f32 -1.442695, %v891_v11  ;;  %v892_v18 = vadd.f32 %v845_v14, %v804_v7  ;;  %v847_v19 = vpop.f32.mrb[19].mxu0  ;;  %v1760_v20 = vpop.f32.mrb[19].mxu1  ;;  %v920_v33 = vadd.f32 %v2287_v56, %v887_v15  ;;  %v2601_v7 = vld [vmem:[%s2795_s1 + $0x48] ss:$12 sps:$4 sm:$0xff]  }
 0x515   :  { %v906_v25 = vadd.f32 %v847_v19, %v805_v16  ;;  %v1484_v27 = vmul.f32 -1.442695, %v905_v21  ;;  %v2626_v11 = vld [vmem:[%s2795_s1 + $0x68] ss:$12 sps:$4 sm:$0xff]   ;;  %v2639_v13 = vld [vmem:[%s2795_s1 + $0x78] ss:$12 sps:$4 sm:$0xff]  }
 0x516   :  { %1936 = vpow2.f32 %v1482_v17  ;;  %v1483_v22 = vmul.f32 -1.442695, %v892_v18  ;;  %v2632_v12 = vld [vmem:[%s2795_s1 + $0x7c] ss:$12 sps:$4 sm:$0xff]   ;;  %v2645_v14 = vld [vmem:[%s2795_s1 + $0x80] ss:$12 sps:$4 sm:$0xff]  }
 0x517   :  { %v1485_v28 = vmul.f32 -1.442695, %v906_v25  ;;  %v2651_v15 = vld [vmem:[%s2795_s1 + $0x94] ss:$12 sps:$4 sm:$0xff]   ;;  %v2658_v16 = vld [vmem:[%s2795_s1 + $0x90] ss:$12 sps:$4 sm:$0xff]  }
 0x518   :  { %1938 = vpow2.f32 %v1483_v22  ;;  %v2664_v17 = vld [vmem:[%s2795_s1 + $0x98] ss:$12 sps:$4 sm:$0xff]   ;;  %v2677_v19 = vld [vmem:[%s2795_s1 + $0xa8] ss:$12 sps:$4 sm:$0xff]   ;;  %v2683_v20 = vld [vmem:[%s2795_s1 + $0xb0] ss:$12 sps:$4 sm:$0xff]  }
 0x519   :  { %1940 = vpow2.f32 %v1484_v27  ;;  %v2670_v18 = vld [vmem:[%s2795_s1 + $0xac] ss:$12 sps:$4 sm:$0xff]   ;;  %v1492_v22 = vld [vmem:[%s2797_s0 + $0x84] sm:$0xff] }
 0x51a   :  { %1942 = vpow2.f32 %v1485_v28  ;;  %v1490_v21 = vld [vmem:[%s2797_s0 + $0x78] sm:$0xff]  ;;  %v954_v27 = vunpack.c.l.bf16 %v1492_v22  ;;  %v955_v31 = vunpack.c.h.bf16 %v1492_v22 }
 0x51b   :  { %v951_v25 = vunpack.c.l.bf16 %v1490_v21 }
 0x520   :  { %v1937_v39 = vpop.eup %1936 }
 0x521   :  { %v899_v47 = vadd.f32 1.0, %v1937_v39 }
 0x522   :  { %v1939_v29 = vpop.eup %1938 }
 0x523   :  { %1944 = vrcp.f32 %v899_v47  ;;  %v900_v45 = vadd.f32 1.0, %v1939_v29  ;;  %v1941_v46 = vpop.eup %1940  ;;  %v952_v47 = vunpack.c.h.bf16 %v1490_v21  ;;  %v2701_v21 = vld [vmem:[%s2798_s2] ss:$0 sm:$0xff] }
 0x524   :  { %v1943_v30 = vpop.eup %1942  ;;  %v913_v32 = vadd.f32 1.0, %v1941_v46 }
 0x525   :  { %1946 = vrcp.f32 %v900_v45  ;;  %v914_v36 = vadd.f32 1.0, %v1943_v30 }
 0x526   :  { %1948 = vrcp.f32 %v913_v32 }
 0x527   :  { %1950 = vrcp.f32 %v914_v36 }
 0x52d   :  { %v1945_v37 = vpop.eup %1944 }
 0x52e   :  { %v921_v38 = vmul.f32 %v1945_v37, %v919_v35 }
 0x52f   :  { %v1947_v41 = vpop.eup %1946 }
 0x530   :  { %v923_v42 = vadd.f32 %v921_v38, %v803_v34  ;;  %v922_v43 = vmul.f32 %v1947_v41, %v920_v33  ;;  %v1949_v23 = vpop.eup %1948 }
 0x531   :  { %v1951_v58 = vpop.eup %1950  ;;  %v927_v26 = vsub.f32 1.0, %v1949_v23  ;;  %v931_v52 = vmul.f32 %v1949_v23, %v2467_v0  ;;  %v2563_v0 = vld [vmem:[%s2795_s1 + $0x18] ss:$12 sps:$4 sm:$0xff]  }
 0x532   :  { %1952 = vtanh.f32 %v923_v42  ;;  %v924_v44 = vadd.f32 %v922_v43, %v806_v40  ;;  %v928_v48 = vsub.f32 1.0, %v1951_v58  ;;  %v932_v55 = vmul.f32 %v1951_v58, %v2469_v62  ;;  %v2569_v62 = vld [vmem:[%s2795_s1 + $0x20] ss:$12 sps:$4 sm:$0xff]  }
 0x534   :  { %1954 = vtanh.f32 %v924_v44 }
 0x53c   :  { %v1953_v24 = vpop.eup %1952 }
 0x53d   :  { %v929_v49 = vmul.f32 %v1953_v24, %v927_v26  ;;  %v1491_v24 = vld [vmem:[%s2797_s0 + $0x80] ss:$12 sps:$4 sm:$0xff]  }
 0x53e   :  { %v1955_v53 = vpop.eup %1954 }
 0x53f   :  { %v930_v54 = vmul.f32 %v1955_v53, %v928_v48  ;;  %v2529_v57 = vadd.f32 %v931_v52, %v929_v49  ;;  %v953_v49 = vunpack.c.l.bf16 %v1491_v24 }
 0x541   :  { %v2531_v50 = vadd.f32 %v932_v55, %v930_v54 }
 0x543   :  { %v935_v59 = vpack.c.bf16 %v2531_v50, %v2529_v57 }
 0x545   :  { %1585 = vst [vmem:[%s2799_s4 + $0x20] sm:$0xff] %v935_v59   ;;  %990 = vmatmul.mubr.bf16.vlgmr.msra.gmra.mrb[20].mxu0 %v935_v59  ;;  %1778 = vmatmul.mubr.bf16.vlgmr.msra.gmra.mrb[20].mxu1 %v935_v59  ;;  %v956_v59 = vunpack.c.h.bf16 %v1491_v24 }
 0x546   :  { %1108 = vmatpush1.bf16.msra.mxu0 %v2541_v51  ;;  %1782 = vmatpush3.bf16.msra.mxu1 %v2547_v60 }
 0x547   :  { %1109 = vmatprep.subr.bf16.mxu0 %v2553_v61  ;;  %1783 = vmatprep.subr.bf16.mxu1 %v2041_v1 }
 0x548   :  { %1139 = vmatprep.mubr.bf16.mxu0 %v2042_v2  ;;  %1797 = vmatprep.mubr.msk.bf16.mxu1 %vm2043_vm0, %v2041_v1 }
 0x54a   :  { %1110 = vmatpush1.bf16.msra.mxu0 %v2563_v0  ;;  %1784 = vmatpush3.bf16.msra.mxu1 %v2569_v62 }
 0x54b   :  { %1111 = vmatprep.subr.bf16.mxu0 %v2575_v63  ;;  %1785 = vmatprep.subr.bf16.mxu1 %v2041_v1 }
 0x54e   :  { %1112 = vmatpush1.bf16.msra.mxu0 %v2582_v4  ;;  %1786 = vmatpush3.bf16.msra.mxu1 %v2588_v5 }
 0x54f   :  { %1113 = vmatprep.subr.bf16.mxu0 %v2594_v6  ;;  %1787 = vmatprep.subr.bf16.mxu1 %v2041_v1 }
 0x552   :  { %1114 = vmatpush1.bf16.msra.mxu0 %v2601_v7  ;;  %1788 = vmatpush3.bf16.msra.mxu1 %v2607_v8 }
 0x553   :  { %1115 = vmatprep.subr.bf16.mxu0 %v2613_v9  ;;  %1789 = vmatprep.subr.bf16.mxu1 %v2041_v1 }
 0x556   :  { %1116 = vmatpush1.bf16.msra.mxu0 %v2620_v10  ;;  %1790 = vmatpush3.bf16.msra.mxu1 %v2626_v11 }
 0x557   :  { %1117 = vmatprep.subr.bf16.mxu0 %v2632_v12  ;;  %1791 = vmatprep.subr.bf16.mxu1 %v2041_v1 }
 0x55a   :  { %1118 = vmatpush1.bf16.msra.mxu0 %v2639_v13  ;;  %1792 = vmatpush3.bf16.msra.mxu1 %v2645_v14 }
 0x55b   :  { %1119 = vmatprep.subr.bf16.mxu0 %v2651_v15  ;;  %1793 = vmatprep.subr.bf16.mxu1 %v2041_v1 }
 0x55e   :  { %1120 = vmatpush1.bf16.msra.mxu0 %v2658_v16  ;;  %1794 = vmatpush3.bf16.msra.mxu1 %v2664_v17 }
 0x55f   :  { %1121 = vmatprep.subr.bf16.mxu0 %v2670_v18  ;;  %1795 = vmatprep.subr.bf16.mxu1 %v2041_v1 }
 0x562   :  { %1122 = vmatpush1.bf16.msra.mxu0 %v2677_v19  ;;  %1796 = vmatpush3.bf16.msra.mxu1 %v2683_v20 }
 0x563   :  { %1257 = vmatprep.subr.bf16.mxu0 %v2512_v3  ;;  %1801 = vmatprep.subr.bf16.mxu1 %v2041_v1 }
 0x618   :  { %v991_v28 = vpop.f32.mrb[20].mxu0  ;;  %v1034_v39 = vpop.f32.mrb[20].mxu1 }
 0x619   :  { %v1041_v29 = vadd.f32 %v991_v28, %v951_v25  ;;  %v993_v45 = vpop.f32.mrb[21].mxu0  ;;  %v1779_v46 = vpop.f32.mrb[21].mxu1  ;;  %v1069_v52 = vadd.f32 %v2287_v56, %v1034_v39 }
 0x61a   :  { %v995_v30 = vpop.f32.mrb[22].mxu0  ;;  %v1037_v3 = vpop.f32.mrb[22].mxu1  ;;  %v1055_v37 = vadd.f32 %v993_v45, %v952_v47 }
 0x61b   :  { %v1494_v32 = vmul.f32 -1.442695, %v1041_v29  ;;  %v1042_v34 = vadd.f32 %v995_v30, %v954_v27  ;;  %v997_v35 = vpop.f32.mrb[23].mxu0  ;;  %v1780_v36 = vpop.f32.mrb[23].mxu1  ;;  %v1070_v22 = vadd.f32 %v2701_v21, %v1037_v3 }
 0x61c   :  { %v1056_v40 = vadd.f32 %v997_v35, %v955_v31  ;;  %v1496_v33 = vmul.f32 -1.442695, %v1055_v37 }
 0x61d   :  { %1956 = vpow2.f32 %v1494_v32  ;;  %v1495_v38 = vmul.f32 -1.442695, %v1042_v34 }
 0x61e   :  { %v1497_v41 = vmul.f32 -1.442695, %v1056_v40  ;;  %v1503_v40 = vld [vmem:[%s2797_s0 + $0x98] ss:$12 sps:$4 sm:$0xff]  }
 0x61f   :  { %1958 = vpow2.f32 %v1495_v38 }
 0x620   :  { %1960 = vpow2.f32 %v1496_v33 }
 0x621   :  { %1962 = vpow2.f32 %v1497_v41  ;;  %v1103_v41 = vunpack.c.l.bf16 %v1503_v40 }
 0x627   :  { %v1957_v42 = vpop.eup %1956 }
 0x628   :  { %v1049_v43 = vadd.f32 1.0, %v1957_v42 }
 0x629   :  { %v1959_v44 = vpop.eup %1958 }
 0x62a   :  { %1964 = vrcp.f32 %v1049_v43  ;;  %v1050_v23 = vadd.f32 1.0, %v1959_v44  ;;  %v1961_v58 = vpop.eup %1960 }
 0x62b   :  { %v1963_v26 = vpop.eup %1962  ;;  %v1063_v48 = vadd.f32 1.0, %v1961_v58  ;;  %v1106_v58 = vunpack.c.h.bf16 %v1503_v40 }
 0x62c   :  { %1966 = vrcp.f32 %v1050_v23  ;;  %v1064_v53 = vadd.f32 1.0, %v1963_v26 }
 0x62d   :  { %1968 = vrcp.f32 %v1063_v48 }
 0x62e   :  { %1970 = vrcp.f32 %v1064_v53 }
 0x634   :  { %v1965_v54 = vpop.eup %1964 }
 0x635   :  { %v1071_v55 = vmul.f32 %v1965_v54, %v1069_v52 }
 0x636   :  { %v1967_v25 = vpop.eup %1966 }
 0x637   :  { %v1073_v27 = vadd.f32 %v1071_v55, %v953_v49  ;;  %v1072_v28 = vmul.f32 %v1967_v25, %v1070_v22  ;;  %v1969_v56 = vpop.eup %1968 }
 0x638   :  { %v1971_v39 = vpop.eup %1970  ;;  %v1077_v29 = vsub.f32 1.0, %v1969_v56  ;;  %v1081_v31 = vmul.f32 %v1969_v56, %v2529_v57  ;;  %v1504_v57 = vld [vmem:[%s2797_s0 + $0x9c] sm:$0xff] }
 0x639   :  { %1972 = vtanh.f32 %v1073_v27  ;;  %v1074_v47 = vadd.f32 %v1072_v28, %v956_v59  ;;  %v1078_v46 = vsub.f32 1.0, %v1971_v39  ;;  %v1082_v35 = vmul.f32 %v1971_v39, %v2531_v50 }
 0x63b   :  { %1974 = vtanh.f32 %v1074_v47 }
 0x643   :  { %v1973_v45 = vpop.eup %1972 }
 0x644   :  { %v1079_v30 = vmul.f32 %v1973_v45, %v1077_v29 }
 0x645   :  { %v1975_v32 = vpop.eup %1974 }
 0x646   :  { %v1080_v34 = vmul.f32 %v1975_v32, %v1078_v46  ;;  %v2706_v3 = vadd.f32 %v1081_v31, %v1079_v30  ;;  %v1514_v46 = vld [vmem:[%s2797_s0 + $0xa8] sm:$0xff]  ;;  %v1516_v30 = vld [vmem:[%s2797_s0 + $0xb4] sm:$0xff] }
 0x647   :  { %v1251_v31 = vunpack.c.l.bf16 %v1514_v46  ;;  %v1254_v32 = vunpack.c.l.bf16 %v1516_v30 }
 0x648   :  { %v2708_v36 = vadd.f32 %v1082_v35, %v1080_v34 }
 0x64a   :  { %v1085_v37 = vpack.c.bf16 %v2708_v36, %v2706_v3 }
 0x64c   :  { %1586 = vst [vmem:[%s2799_s4 + $0x28] sm:$0xff] %v1085_v37   ;;  %1140 = vmatmul.mubr.bf16.vlgmr.msra.gmra.mrb[24].mxu0 %v1085_v37  ;;  %1798 = vmatmul.mubr.bf16.vlgmr.msra.gmra.mrb[24].mxu1 %v1085_v37 }
 0x64d   :  { %1258 = vmatpush1.bf16.msra.mxu0 %v2541_v51  ;;  %1802 = vmatpush3.bf16.msra.mxu1 %v2547_v60  ;;  %v1104_v51 = vunpack.c.l.bf16 %v1504_v57 }
 0x64e   :  { %1259 = vmatprep.subr.bf16.mxu0 %v2553_v61  ;;  %1803 = vmatprep.subr.bf16.mxu1 %v2041_v1 }
 0x64f   :  { %1289 = vmatprep.mubr.bf16.mxu0 %v2042_v2  ;;  %1817 = vmatprep.mubr.msk.bf16.mxu1 %vm2043_vm0, %v2041_v1  ;;  %v1502_v2 = vld [vmem:[%s2797_s0 + $0x90] sm:$0xff] }
 0x650   :  { %v1101_v50 = vunpack.c.l.bf16 %v1502_v2 }
 0x651   :  { %1260 = vmatpush1.bf16.msra.mxu0 %v2563_v0  ;;  %1804 = vmatpush3.bf16.msra.mxu1 %v2569_v62  ;;  %v1102_v0 = vunpack.c.h.bf16 %v1502_v2 }
 0x652   :  { %1261 = vmatprep.subr.bf16.mxu0 %v2575_v63  ;;  %1805 = vmatprep.subr.bf16.mxu1 %v2041_v1 }
 0x655   :  { %1262 = vmatpush1.bf16.msra.mxu0 %v2582_v4  ;;  %1806 = vmatpush3.bf16.msra.mxu1 %v2588_v5 }
 0x656   :  { %1263 = vmatprep.subr.bf16.mxu0 %v2594_v6  ;;  %1807 = vmatprep.subr.bf16.mxu1 %v2041_v1  ;;  %v1105_v6 = vunpack.c.h.bf16 %v1504_v57 }
 0x659   :  { %1264 = vmatpush1.bf16.msra.mxu0 %v2601_v7  ;;  %1808 = vmatpush3.bf16.msra.mxu1 %v2607_v8 }
 0x65a   :  { %1265 = vmatprep.subr.bf16.mxu0 %v2613_v9  ;;  %1809 = vmatprep.subr.bf16.mxu1 %v2041_v1 }
 0x65d   :  { %1266 = vmatpush1.bf16.msra.mxu0 %v2620_v10  ;;  %1810 = vmatpush3.bf16.msra.mxu1 %v2626_v11 }
 0x65e   :  { %1267 = vmatprep.subr.bf16.mxu0 %v2632_v12  ;;  %1811 = vmatprep.subr.bf16.mxu1 %v2041_v1 }
 0x661   :  { %1268 = vmatpush1.bf16.msra.mxu0 %v2639_v13  ;;  %1812 = vmatpush3.bf16.msra.mxu1 %v2645_v14 }
 0x662   :  { %1269 = vmatprep.subr.bf16.mxu0 %v2651_v15  ;;  %1813 = vmatprep.subr.bf16.mxu1 %v2041_v1 }
 0x665   :  { %1270 = vmatpush1.bf16.msra.mxu0 %v2658_v16  ;;  %1814 = vmatpush3.bf16.msra.mxu1 %v2664_v17 }
 0x666   :  { %1271 = vmatprep.subr.bf16.mxu0 %v2670_v18  ;;  %1815 = vmatprep.subr.bf16.mxu1 %v2041_v1 }
 0x669   :  { %1272 = vmatpush1.bf16.msra.mxu0 %v2677_v19  ;;  %1816 = vmatpush3.bf16.msra.mxu1 %v2683_v20 }
 0x71f   :  { %v1141_v60 = vpop.f32.mrb[24].mxu0  ;;  %v1184_v61 = vpop.f32.mrb[24].mxu1 }
 0x720   :  { %v1191_v62 = vadd.f32 %v1141_v60, %v1101_v50  ;;  %v1143_v63 = vpop.f32.mrb[25].mxu0  ;;  %v1799_v1 = vpop.f32.mrb[25].mxu1  ;;  %v1219_v42 = vadd.f32 %v2701_v21, %v1184_v61 }
 0x721   :  { %v1145_v4 = vpop.f32.mrb[26].mxu0  ;;  %v1187_v5 = vpop.f32.mrb[26].mxu1  ;;  %v1205_v11 = vadd.f32 %v1143_v63, %v1102_v0 }
 0x722   :  { %v1506_v7 = vmul.f32 -1.442695, %v1191_v62  ;;  %v1192_v8 = vadd.f32 %v1145_v4, %v1104_v51  ;;  %v1147_v9 = vpop.f32.mrb[27].mxu0  ;;  %v1800_v10 = vpop.f32.mrb[27].mxu1  ;;  %v1220_v26 = vadd.f32 %v2701_v21, %v1187_v5  ;;  %v1255_v51 = vunpack.c.h.bf16 %v1516_v30 }
 0x723   :  { %v1206_v13 = vadd.f32 %v1147_v9, %v1105_v6  ;;  %v1508_v14 = vmul.f32 -1.442695, %v1205_v11 }
 0x724   :  { %1976 = vpow2.f32 %v1506_v7  ;;  %v1507_v12 = vmul.f32 -1.442695, %v1192_v8 }
 0x725   :  { %v1509_v15 = vmul.f32 -1.442695, %v1206_v13  ;;  %v1515_v13 = vld [vmem:[%s2797_s0 + $0xb0] sm:$0xf] }
 0x726   :  { %1978 = vpow2.f32 %v1507_v12 }
 0x727   :  { %1980 = vpow2.f32 %v1508_v14 }
 0x728   :  { %1982 = vpow2.f32 %v1509_v15  ;;  %v1517_v15 = vld [vmem:[%s2797_s0 + $0xbc] sm:$0xf] }
 0x72e   :  { %v1977_v16 = vpop.eup %1976 }
 0x72f   :  { %v1199_v17 = vadd.f32 1.0, %v1977_v16  ;;  %v1253_v16 = vunpack.c.l.bf16 %v1515_v13 }
 0x730   :  { %v1979_v18 = vpop.eup %1978 }
 0x731   :  { %1984 = vrcp.f32 %v1199_v17  ;;  %v1200_v19 = vadd.f32 1.0, %v1979_v18  ;;  %v1981_v20 = vpop.eup %1980 }
 0x732   :  { %v1983_v38 = vpop.eup %1982  ;;  %v1213_v33 = vadd.f32 1.0, %v1981_v20 }
 0x733   :  { %1986 = vrcp.f32 %v1200_v19  ;;  %v1214_v43 = vadd.f32 1.0, %v1983_v38  ;;  %v1256_v38 = vunpack.c.l.bf16 %v1517_v15 }
 0x734   :  { %1988 = vrcp.f32 %v1213_v33 }
 0x735   :  { %1990 = vrcp.f32 %v1214_v43 }
 0x73b   :  { %v1985_v44 = vpop.eup %1984 }
 0x73c   :  { %v1221_v23 = vmul.f32 %v1985_v44, %v1219_v42 }
 0x73d   :  { %v1987_v24 = vpop.eup %1986 }
 0x73e   :  { %v1223_v48 = vadd.f32 %v1221_v23, %v1103_v41  ;;  %v1222_v49 = vmul.f32 %v1987_v24, %v1220_v26  ;;  %v1989_v53 = vpop.eup %1988 }
 0x73f   :  { %v1991_v54 = vpop.eup %1990  ;;  %v1227_v55 = vsub.f32 1.0, %v1989_v53  ;;  %v1231_v27 = vmul.f32 %v1989_v53, %v2706_v3  ;;  %v1252_v3 = vunpack.c.h.bf16 %v1514_v46 }
 0x740   :  { %1992 = vtanh.f32 %v1223_v48  ;;  %v1224_v52 = vadd.f32 %v1222_v49, %v1106_v58  ;;  %v1228_v22 = vsub.f32 1.0, %v1991_v54  ;;  %v1232_v56 = vmul.f32 %v1991_v54, %v2708_v36 }
 0x742   :  { %1994 = vtanh.f32 %v1224_v52 }
 0x74a   :  { %v1993_v59 = vpop.eup %1992 }
 0x74b   :  { %v1229_v25 = vmul.f32 %v1993_v59, %v1227_v55 }
 0x74c   :  { %v1995_v28 = vpop.eup %1994 }
 0x74d   :  { %v1230_v47 = vmul.f32 %v1995_v28, %v1228_v22  ;;  %v2761_v39 = vadd.f32 %v1231_v27, %v1229_v25 }
 0x74f   :  { %v2763_v29 = vadd.f32 %v1232_v56, %v1230_v47 }
 0x751   :  { %v1235_v45 = vpack.c.bf16 %v2763_v29, %v2761_v39 }
 0x753   :  { %1587 = vst [vmem:[%s2799_s4 + $0x30] sm:$0xff] %v1235_v45   ;;  %1290 = vmatmul.mubr.bf16.vlgmr.msra.gmra.mrb[28].mxu0 %v1235_v45  ;;  %1818 = vmatmul.mubr.bf16.vlgmr.msra.gmra.mrb[28].mxu1 %v1235_v45 }
 0x826   :  { %v1291_v34 = vpop.f32.mrb[28].mxu0  ;;  %v1334_v35 = vpop.f32.mrb[28].mxu1 }
 0x827   :  { %v1341_v36 = vadd.f32 %v1291_v34, %v1251_v31  ;;  %v1293_v37 = vpop.f32.mrb[29].mxu0  ;;  %v1819_v2 = vpop.f32.mrb[29].mxu1  ;;  %v1369_v17 = vadd.f32 %v2701_v21, %v1334_v35 }
 0x828   :  { %v1295_v57 = vpop.f32.mrb[30].mxu0  ;;  %v1337_v50 = vpop.f32.mrb[30].mxu1  ;;  %v1355_v63 = vadd.f32 %v1293_v37, %v1252_v3 }
 0x829   :  { %v1518_v60 = vmul.f32 -1.442695, %v1341_v36  ;;  %v1342_v61 = vadd.f32 %v1295_v57, %v1254_v32  ;;  %v1297_v0 = vpop.f32.mrb[31].mxu0  ;;  %v1820_v62 = vpop.f32.mrb[31].mxu1  ;;  %v1370_v40 = vadd.f32 %v2701_v21, %v1337_v50 }
 0x82a   :  { %v1356_v4 = vadd.f32 %v1297_v0, %v1255_v51  ;;  %v1520_v5 = vmul.f32 -1.442695, %v1355_v63 }
 0x82b   :  { %1996 = vpow2.f32 %v1518_v60  ;;  %v1519_v1 = vmul.f32 -1.442695, %v1342_v61 }
 0x82c   :  { %v1521_v6 = vmul.f32 -1.442695, %v1356_v4 }
 0x82d   :  { %1998 = vpow2.f32 %v1519_v1 }
 0x82e   :  { %2000 = vpow2.f32 %v1520_v5 }
 0x82f   :  { %2002 = vpow2.f32 %v1521_v6 }
 0x835   :  { %v1997_v7 = vpop.eup %1996 }
 0x836   :  { %v1349_v8 = vadd.f32 1.0, %v1997_v7 }
 0x837   :  { %v1999_v9 = vpop.eup %1998 }
 0x838   :  { %2004 = vrcp.f32 %v1349_v8  ;;  %v1350_v10 = vadd.f32 1.0, %v1999_v9  ;;  %v2001_v11 = vpop.eup %2000 }
 0x839   :  { %v2003_v12 = vpop.eup %2002  ;;  %v1363_v14 = vadd.f32 1.0, %v2001_v11 }
 0x83a   :  { %2006 = vrcp.f32 %v1350_v10  ;;  %v1364_v18 = vadd.f32 1.0, %v2003_v12 }
 0x83b   :  { %2008 = vrcp.f32 %v1363_v14 }
 0x83c   :  { %2010 = vrcp.f32 %v1364_v18 }
 0x842   :  { %v2005_v19 = vpop.eup %2004 }
 0x843   :  { %v1371_v20 = vmul.f32 %v2005_v19, %v1369_v17 }
 0x844   :  { %v2007_v33 = vpop.eup %2006 }
 0x845   :  { %v1373_v41 = vadd.f32 %v1371_v20, %v1253_v16  ;;  %v1372_v42 = vmul.f32 %v2007_v33, %v1370_v40  ;;  %v2009_v44 = vpop.eup %2008 }
 0x846   :  { %v2011_v23 = vpop.eup %2010  ;;  %v1377_v58 = vsub.f32 1.0, %v2009_v44  ;;  %v1381_v48 = vmul.f32 %v2009_v44, %v2761_v39 }
 0x847   :  { %2012 = vtanh.f32 %v1373_v41  ;;  %v1374_v43 = vadd.f32 %v1372_v42, %v1256_v38  ;;  %v1378_v49 = vsub.f32 1.0, %v2011_v23  ;;  %v1382_v21 = vmul.f32 %v2011_v23, %v2763_v29 }
 0x849   :  { %2014 = vtanh.f32 %v1374_v43 }
 0x851   :  { %v2013_v26 = vpop.eup %2012 }
 0x852   :  { %v1379_v24 = vmul.f32 %v2013_v26, %v1377_v58 }
 0x853   :  { %v2015_v52 = vpop.eup %2014 }
 0x854   :  { %v1383_v53 = vadd.f32 %v1381_v48, %v1379_v24  ;;  %v1380_v54 = vmul.f32 %v2015_v52, %v1378_v49 }
 0x856   :  { %1401 = vst [vmem:[%s2800_s5] sm:$0xff] %v1383_v53  ;;  %v1384_v55 = vadd.f32 %v1382_v21, %v1380_v54 }
 0x858   :  { %v1580_v59 = vpack.c.bf16 %v1384_v55, %v1383_v53  ;;  %1402 = vst [vmem:[%s2800_s5 + $0x8] sm:$0xff] %v1384_v55 }
 0x85a   :  { %1588 = vst [vmem:[%s2799_s4 + $0x38] sm:$0xff] %v1580_v59  }

</bundles_post_ra>
